<compile_context>
chip_gen: v7x
topology: tpu7x:2x2x1
jax: 0.10.0
libtpu: 0.0.40
codegen_flags: <defaults>
</compile_context>

<pallas_src>
import functools

import jax
import jax.numpy as jnp
from jax import lax
from jax.experimental import pallas as pl
from jax.experimental.pallas import tpu as pltpu

LN_EPS = 1e-5                 # PyTorch nn.LayerNorm default
_INV_SQRT2 = 0.7071067811865476


def _layernorm(x, gamma, beta):
    mean = jnp.mean(x, axis=-1, keepdims=True)
    var = jnp.mean((x - mean) ** 2, axis=-1, keepdims=True)
    return (x - mean) * lax.rsqrt(var + LN_EPS) * gamma + beta


# --------------------------------------------------------------------------- #
# Fused transformer kernel: one grid step = (batch element b, layer l)
# --------------------------------------------------------------------------- #
def _transformer_kernel(x_ref, g1_ref, be1_ref, wqkv_ref, wo_ref, bo_ref,
                        g2_ref, be2_ref, w1_ref, b1_ref, w2_ref, b2_ref,
                        o_ref, acc_ref, *, heads, dim_head):
    l = pl.program_id(1)
    inner = heads * dim_head

    # Load the activation carry for this batch element (resident across layers).
    @pl.when(l == 0)
    def _():
        acc_ref[...] = x_ref[...].astype(jnp.float32)

    x = acc_ref[...]                                        # (N, D), f32

    # ---------------- PreNorm + Attention ---------------- #
    y = _layernorm(x, g1_ref[...], be1_ref[...])            # f32
    # Fused QKV projection (bf16 inputs, f32 accumulation). The softmax scale is
    # already folded into the q columns of wqkv at pack time.
    qkv = jnp.dot(y.astype(jnp.bfloat16), wqkv_ref[...],
                  preferred_element_type=jnp.float32)       # (N, 3*inner)

    def head_major(base):
        # (N, inner) slice -> (heads, N, dh) head-batched tensor
        return jnp.stack(
            [qkv[:, base + h * dim_head: base + (h + 1) * dim_head]
             for h in range(heads)], axis=0)

    qh = head_major(0)                                      # (heads, N, dh)
    kh = head_major(inner)
    vh = head_major(2 * inner)

    # dots[h, i, j] = sum_d q[h,i,d] * k[h,j,d]   (batched over heads)
    dots = lax.dot_general(qh.astype(jnp.bfloat16), kh.astype(jnp.bfloat16),
                           (((2,), (2,)), ((0,), (0,))),
                           preferred_element_type=jnp.float32)   # (heads, N, N)

    # softmax across the HEADS axis (module uses nn.Softmax(dim=1) on (b,h,i,j))
    m = jnp.max(dots, axis=0, keepdims=True)
    e = jnp.exp(dots - m)
    denom = jnp.sum(e, axis=0, keepdims=True)
    attn = e * pl.reciprocal(denom, approx=True)            # (heads, N, N)

    # out[h, i, d] = sum_j attn[h,i,j] * v[h,j,d]
    oh = lax.dot_general(attn.astype(jnp.bfloat16), vh.astype(jnp.bfloat16),
                         (((2,), (1,)), ((0,), (0,))),
                         preferred_element_type=jnp.float32)     # (heads, N, dh)

    # Output projection folded per head (== concat_h(oh) @ Wo), no concatenate:
    proj = lax.dot_general(oh.astype(jnp.bfloat16), wo_ref[...],
                           (((2,), (1,)), ((0,), (0,))),
                           preferred_element_type=jnp.float32)   # (heads, N, D)
    x = x + jnp.sum(proj, axis=0) + bo_ref[...]              # residual

    # ---------------- PreNorm + FeedForward ---------------- #
    y = _layernorm(x, g2_ref[...], be2_ref[...])
    h = jnp.dot(y.astype(jnp.bfloat16), w1_ref[...],
                preferred_element_type=jnp.float32) + b1_ref[...]
    # exact GELU (PyTorch nn.GELU default): 0.5*x*(1+erf(x/sqrt(2)))
    h = 0.5 * h * (1.0 + lax.erf(h * _INV_SQRT2))
    out = jnp.dot(h.astype(jnp.bfloat16), w2_ref[...],
                  preferred_element_type=jnp.float32) + b2_ref[...]
    x = x + out                                              # residual

    acc_ref[...] = x
    @pl.when(l == pl.num_programs(1) - 1)
    def _():
        o_ref[...] = x.astype(o_ref.dtype)


# --------------------------------------------------------------------------- #
# pallas_call wrapper
# --------------------------------------------------------------------------- #
def _wspec(*tail):
    """BlockSpec for a depth-stacked weight: block (None, *tail), index (l, 0...)."""
    zeros = (0,) * len(tail)
    return pl.BlockSpec((None,) + tail, lambda b, l, _z=zeros: (l,) + _z)


def transformer_forward(x, packed, *, heads, dim_head):
    B, N, D = x.shape
    depth = packed["wqkv"].shape[0]
    inner = heads * dim_head
    mlp = packed["w1"].shape[-1]

    act_spec = pl.BlockSpec((None, N, D), lambda b, l: (b, 0, 0))
    in_specs = [
        act_spec,                      # x (fetched once per b; constant in l)
        _wspec(1, D), _wspec(1, D),    # LayerNorm 1 gamma / beta
        _wspec(D, 3 * inner),          # fused qkv weight (scale folded into q)
        _wspec(heads, dim_head, D),    # output projection, head-major
        _wspec(1, D),                  # output projection bias
        _wspec(1, D), _wspec(1, D),    # LayerNorm 2 gamma / beta
        _wspec(D, mlp), _wspec(1, mlp),   # FFN first linear
        _wspec(mlp, D), _wspec(1, D),     # FFN second linear
    ]

    kernel = functools.partial(_transformer_kernel, heads=heads,
                               dim_head=dim_head)
    return pl.pallas_call(
        kernel,
        out_shape=jax.ShapeDtypeStruct((B, N, D), x.dtype),
        grid=(B, depth),
        in_specs=in_specs,
        out_specs=act_spec,
        scratch_shapes=[pltpu.VMEM((N, D), jnp.float32)],   # resident activation
        compiler_params=pltpu.CompilerParams(
            dimension_semantics=("parallel", "arbitrary"),
            vmem_limit_bytes=64 * 1024 * 1024),
    )(x, packed["g1"], packed["be1"], packed["wqkv"], packed["wo"],
      packed["bo"], packed["g2"], packed["be2"], packed["w1"], packed["b1"],
      packed["w2"], packed["b2"])


# --------------------------------------------------------------------------- #
# Parameter init (module-equivalent f32 params) and kernel-side packing
# --------------------------------------------------------------------------- #
def init_params(key, depth, dim, heads, dim_head, mlp_dim):
    inner = heads * dim_head
    layers = []
    for layer in range(depth):
        ks = jax.random.split(jax.random.fold_in(key, layer), 12)

        def unif(k, shape, fan_in):
            lim = 1.0 / (fan_in ** 0.5)
            return jax.random.uniform(k, shape, jnp.float32, -lim, lim)

        layers.append(dict(
            g1=1.0 + 0.1 * jax.random.normal(ks[0], (1, dim), jnp.float32),
            be1=0.1 * jax.random.normal(ks[1], (1, dim), jnp.float32),
            wq=unif(ks[2], (dim, inner), dim),
            wk=unif(ks[3], (dim, inner), dim),
            wv=unif(ks[4], (dim, inner), dim),
            wo=unif(ks[5], (inner, dim), inner),
            bo=unif(ks[6], (1, dim), inner),
            g2=1.0 + 0.1 * jax.random.normal(ks[7], (1, dim), jnp.float32),
            be2=0.1 * jax.random.normal(ks[8], (1, dim), jnp.float32),
            w1=unif(ks[9], (dim, mlp_dim), dim),
            b1=unif(ks[10], (1, mlp_dim), dim),
            w2=unif(ks[11], (mlp_dim, dim), mlp_dim),
            b2=unif(jax.random.fold_in(ks[11], 7), (1, dim), mlp_dim),
        ))
    return layers


def pack_for_kernel(layers, *, heads, dim_head):
    """Stack per-layer params along depth, fold softmax scale into wq, reshape wo
    head-major, and cast the large matmul weights to bf16."""
    scale = dim_head ** -0.5
    depth = len(layers)

    def stk(name):
        return jnp.stack([p[name] for p in layers], axis=0)

    wq, wk, wv = stk("wq"), stk("wk"), stk("wv")            # (depth, D, inner)
    D = wq.shape[1]
    wqkv = jnp.concatenate([wq * scale, wk, wv], axis=-1)   # (depth, D, 3*inner)
    wo = stk("wo").reshape(depth, heads, dim_head, D)       # head-major

    return dict(
        g1=stk("g1"), be1=stk("be1"),
        wqkv=wqkv.astype(jnp.bfloat16),
        wo=wo.astype(jnp.bfloat16),
        bo=stk("bo"),
        g2=stk("g2"), be2=stk("be2"),
        w1=stk("w1").astype(jnp.bfloat16), b1=stk("b1"),
        w2=stk("w2").astype(jnp.bfloat16), b2=stk("b2"),
    )


# --------------------------------------------------------------------------- #
# Pure-JAX f32 reference (mirrors the PyTorch forward exactly)
# --------------------------------------------------------------------------- #
def reference_forward(x, layers, *, heads, dim_head):
    scale = dim_head ** -0.5
    for p in layers:
        B, N, D = x.shape
        y = _layernorm(x, p["g1"], p["be1"])
        q, k, v = y @ p["wq"], y @ p["wk"], y @ p["wv"]

        def split(t):  # b n (h d) -> b h n d
            return t.reshape(B, N, heads, dim_head).transpose(0, 2, 1, 3)

        q, k, v = split(q), split(k), split(v)
        dots = jnp.einsum("bhid,bhjd->bhij", q, k) * scale
        attn = jax.nn.softmax(dots, axis=1)          # softmax over heads (dim=1)
        out = jnp.einsum("bhij,bhjd->bhid", attn, v)
        out = out.transpose(0, 2, 1, 3).reshape(B, N, heads * dim_head)
        x = out @ p["wo"] + p["bo"] + x
        y = _layernorm(x, p["g2"], p["be2"])
        h = y @ p["w1"] + p["b1"]
        h = 0.5 * h * (1.0 + lax.erf(h * _INV_SQRT2))
        x = h @ p["w2"] + p["b2"] + x
    return x


if __name__ == "__main__":
    B, N = 2, 8
    dim, depth, heads, dim_head, mlp_dim = 32, 2, 4, 8, 64

    key = jax.random.PRNGKey(0)
    kx, kp = jax.random.split(key)
    x = jax.random.normal(kx, (B, N, dim), jnp.float32)
    layers = init_params(kp, depth, dim, heads, dim_head, mlp_dim)
    packed = pack_for_kernel(layers, heads=heads, dim_head=dim_head)

    out = transformer_forward(x, packed, heads=heads, dim_head=dim_head)
    out = jax.block_until_ready(out)

    ref = reference_forward(x, layers, heads=heads, dim_head=dim_head)
    assert out.shape == (B, N, dim), out.shape
    assert jnp.all(jnp.isfinite(out))
    # bf16 matmul inputs (f32 accumulation) vs f32 reference
    assert jnp.allclose(out, ref, rtol=2e-2, atol=2e-2), (
        float(jnp.max(jnp.abs(out - ref))))

    print("KERNEL_OK")
</pallas_src>

<mosaic_0001>
module attributes {stable_mosaic.version = 11 : i64} {
  func.func @_transformer_kernel(%arg0: i32, %arg1: i32, %arg2: memref<1x8x32xf32, #tpu.memory_space<vmem>>, %arg3: memref<1x1x32xf32, #tpu.memory_space<vmem>>, %arg4: memref<1x1x32xf32, #tpu.memory_space<vmem>>, %arg5: memref<1x32x96xbf16, #tpu.memory_space<vmem>>, %arg6: memref<1x4x8x32xbf16, #tpu.memory_space<vmem>>, %arg7: memref<1x1x32xf32, #tpu.memory_space<vmem>>, %arg8: memref<1x1x32xf32, #tpu.memory_space<vmem>>, %arg9: memref<1x1x32xf32, #tpu.memory_space<vmem>>, %arg10: memref<1x32x64xbf16, #tpu.memory_space<vmem>>, %arg11: memref<1x1x64xf32, #tpu.memory_space<vmem>>, %arg12: memref<1x64x32xbf16, #tpu.memory_space<vmem>>, %arg13: memref<1x1x32xf32, #tpu.memory_space<vmem>>, %arg14: memref<1x8x32xf32, #tpu.memory_space<vmem>>, %arg15: memref<8x32xf32, #tpu.memory_space<vmem>>) attributes {dimension_semantics = [#tpu.dimension_semantics<parallel>, #tpu.dimension_semantics<arbitrary>], iteration_bounds = array<i64: 2, 2>, scalar_prefetch = 0 : i64, scratch_operands = 1 : i64, tpu.core_type = #tpu.core_type<tc>, window_params = [{transform_indices = @transform_0, window_bounds = array<i64: 1, 8, 32>}, {transform_indices = @transform_1, window_bounds = array<i64: 1, 1, 32>}, {transform_indices = @transform_2, window_bounds = array<i64: 1, 1, 32>}, {transform_indices = @transform_3, window_bounds = array<i64: 1, 32, 96>}, {transform_indices = @transform_4, window_bounds = array<i64: 1, 4, 8, 32>}, {transform_indices = @transform_5, window_bounds = array<i64: 1, 1, 32>}, {transform_indices = @transform_6, window_bounds = array<i64: 1, 1, 32>}, {transform_indices = @transform_7, window_bounds = array<i64: 1, 1, 32>}, {transform_indices = @transform_8, window_bounds = array<i64: 1, 32, 64>}, {transform_indices = @transform_9, window_bounds = array<i64: 1, 1, 64>}, {transform_indices = @transform_10, window_bounds = array<i64: 1, 64, 32>}, {transform_indices = @transform_11, window_bounds = array<i64: 1, 1, 32>}, {transform_indices = @transform_12, window_bounds = array<i64: 1, 8, 32>}]} {
    %c0_i32 = arith.constant 0 : i32
    %0 = arith.cmpi eq, %arg1, %c0_i32 : i32
    %1 = arith.extui %0 : i1 to i32
    %c0_i32_0 = arith.constant 0 : i32
    %2 = arith.cmpi ne, %1, %c0_i32_0 : i32
    scf.if %2 {
      %c0_60 = arith.constant 0 : index
      %c0_61 = arith.constant 0 : index
      %c0_62 = arith.constant 0 : index
      %142 = vector.load %arg2[%c0_60, %c0_61, %c0_62] : memref<1x8x32xf32, #tpu.memory_space<vmem>>, vector<1x8x32xf32>
      %143 = vector.shape_cast %142 : vector<1x8x32xf32> to vector<8x32xf32>
      %c0_63 = arith.constant 0 : index
      %c0_64 = arith.constant 0 : index
      %144 = vector.load %arg15[%c0_63, %c0_64] : memref<8x32xf32, #tpu.memory_space<vmem>>, vector<8x32xf32>
      tpu.vector_store %arg15[%c0_63, %c0_64], %143 {strides = array<i32>} : memref<8x32xf32, #tpu.memory_space<vmem>>, vector<8x32xf32>,
    } else {
    }
    %c0 = arith.constant 0 : index
    %c0_1 = arith.constant 0 : index
    %3 = vector.load %arg15[%c0, %c0_1] : memref<8x32xf32, #tpu.memory_space<vmem>>, vector<8x32xf32>
    %c0_2 = arith.constant 0 : index
    %c0_3 = arith.constant 0 : index
    %c0_4 = arith.constant 0 : index
    %4 = vector.load %arg3[%c0_2, %c0_3, %c0_4] : memref<1x1x32xf32, #tpu.memory_space<vmem>>, vector<1x1x32xf32>
    %5 = vector.shape_cast %4 : vector<1x1x32xf32> to vector<1x32xf32>
    %c0_5 = arith.constant 0 : index
    %c0_6 = arith.constant 0 : index
    %c0_7 = arith.constant 0 : index
    %6 = vector.load %arg4[%c0_5, %c0_6, %c0_7] : memref<1x1x32xf32, #tpu.memory_space<vmem>>, vector<1x1x32xf32>
    %7 = vector.shape_cast %6 : vector<1x1x32xf32> to vector<1x32xf32>
    %cst = arith.constant dense<0.000000e+00> : vector<8xf32>
    %8 = vector.multi_reduction <add>, %3, %cst [1] : vector<8x32xf32> to vector<8xf32>
    %9 = vector.shape_cast %8 : vector<8xf32> to vector<8x1xf32>
    %cst_8 = arith.constant 3.200000e+01 : f32
    %10 = vector.broadcast %cst_8 : f32 to vector<8x1xf32>
    %11 = arith.divf %9, %10 : vector<8x1xf32>
    %12 = vector.broadcast %11 : vector<8x1xf32> to vector<8x32xf32>
    %13 = arith.subf %3, %12 : vector<8x32xf32>
    %14 = arith.mulf %13, %13 : vector<8x32xf32>
    %cst_9 = arith.constant dense<0.000000e+00> : vector<8xf32>
    %15 = vector.multi_reduction <add>, %14, %cst_9 [1] : vector<8x32xf32> to vector<8xf32>
    %16 = vector.shape_cast %15 : vector<8xf32> to vector<8x1xf32>
    %cst_10 = arith.constant 3.200000e+01 : f32
    %17 = vector.broadcast %cst_10 : f32 to vector<8x1xf32>
    %18 = arith.divf %16, %17 : vector<8x1xf32>
    %19 = vector.broadcast %11 : vector<8x1xf32> to vector<8x32xf32>
    %20 = arith.subf %3, %19 : vector<8x32xf32>
    %cst_11 = arith.constant 9.99999974E-6 : f32
    %21 = vector.broadcast %cst_11 : f32 to vector<8x1xf32>
    %22 = arith.addf %18, %21 : vector<8x1xf32>
    %23 = math.rsqrt %22 : vector<8x1xf32>
    %24 = vector.broadcast %23 : vector<8x1xf32> to vector<8x32xf32>
    %25 = arith.mulf %20, %24 : vector<8x32xf32>
    %26 = vector.broadcast %5 : vector<1x32xf32> to vector<8x32xf32>
    %27 = arith.mulf %25, %26 : vector<8x32xf32>
    %28 = vector.broadcast %7 : vector<1x32xf32> to vector<8x32xf32>
    %29 = arith.addf %27, %28 : vector<8x32xf32>
    %30 = arith.truncf %29 : vector<8x32xf32> to vector<8x32xbf16>
    %c0_12 = arith.constant 0 : index
    %c0_13 = arith.constant 0 : index
    %c0_14 = arith.constant 0 : index
    %31 = vector.load %arg5[%c0_12, %c0_13, %c0_14] : memref<1x32x96xbf16, #tpu.memory_space<vmem>>, vector<1x32x96xbf16>
    %32 = vector.shape_cast %31 : vector<1x32x96xbf16> to vector<32x96xbf16>
    %cst_15 = arith.constant dense<0.000000e+00> : vector<8x96xf32>
    %33 = tpu.matmul %30, %32, %cst_15 {dimension_numbers = #tpu.dot_dimension_numbers<[1], [0], [0], [1], [0, 0, 1, 1], [], []>} : vector<8x32xbf16>, vector<32x96xbf16>, vector<8x96xf32> -> vector<8x96xf32>
    %34 = vector.extract_strided_slice %33 {offsets = [0, 0], sizes = [8, 8], strides = [1, 1]} : vector<8x96xf32> to vector<8x8xf32>
    %35 = vector.extract_strided_slice %33 {offsets = [0, 8], sizes = [8, 8], strides = [1, 1]} : vector<8x96xf32> to vector<8x8xf32>
    %36 = vector.extract_strided_slice %33 {offsets = [0, 16], sizes = [8, 8], strides = [1, 1]} : vector<8x96xf32> to vector<8x8xf32>
    %37 = vector.extract_strided_slice %33 {offsets = [0, 24], sizes = [8, 8], strides = [1, 1]} : vector<8x96xf32> to vector<8x8xf32>
    %38 = vector.shape_cast %34 : vector<8x8xf32> to vector<1x8x8xf32>
    %39 = vector.shape_cast %35 : vector<8x8xf32> to vector<1x8x8xf32>
    %40 = vector.shape_cast %36 : vector<8x8xf32> to vector<1x8x8xf32>
    %41 = vector.shape_cast %37 : vector<8x8xf32> to vector<1x8x8xf32>
    %42 = tpu.concatenate %38, %39, %40, %41 in 0 : vector<1x8x8xf32>, vector<1x8x8xf32>, vector<1x8x8xf32>, vector<1x8x8xf32> -> vector<4x8x8xf32>
    %43 = vector.extract_strided_slice %33 {offsets = [0, 32], sizes = [8, 8], strides = [1, 1]} : vector<8x96xf32> to vector<8x8xf32>
    %44 = vector.extract_strided_slice %33 {offsets = [0, 40], sizes = [8, 8], strides = [1, 1]} : vector<8x96xf32> to vector<8x8xf32>
    %45 = vector.extract_strided_slice %33 {offsets = [0, 48], sizes = [8, 8], strides = [1, 1]} : vector<8x96xf32> to vector<8x8xf32>
    %46 = vector.extract_strided_slice %33 {offsets = [0, 56], sizes = [8, 8], strides = [1, 1]} : vector<8x96xf32> to vector<8x8xf32>
    %47 = vector.shape_cast %43 : vector<8x8xf32> to vector<1x8x8xf32>
    %48 = vector.shape_cast %44 : vector<8x8xf32> to vector<1x8x8xf32>
    %49 = vector.shape_cast %45 : vector<8x8xf32> to vector<1x8x8xf32>
    %50 = vector.shape_cast %46 : vector<8x8xf32> to vector<1x8x8xf32>
    %51 = tpu.concatenate %47, %48, %49, %50 in 0 : vector<1x8x8xf32>, vector<1x8x8xf32>, vector<1x8x8xf32>, vector<1x8x8xf32> -> vector<4x8x8xf32>
    %52 = vector.extract_strided_slice %33 {offsets = [0, 64], sizes = [8, 8], strides = [1, 1]} : vector<8x96xf32> to vector<8x8xf32>
    %53 = vector.extract_strided_slice %33 {offsets = [0, 72], sizes = [8, 8], strides = [1, 1]} : vector<8x96xf32> to vector<8x8xf32>
    %54 = vector.extract_strided_slice %33 {offsets = [0, 80], sizes = [8, 8], strides = [1, 1]} : vector<8x96xf32> to vector<8x8xf32>
    %55 = vector.extract_strided_slice %33 {offsets = [0, 88], sizes = [8, 8], strides = [1, 1]} : vector<8x96xf32> to vector<8x8xf32>
    %56 = vector.shape_cast %52 : vector<8x8xf32> to vector<1x8x8xf32>
    %57 = vector.shape_cast %53 : vector<8x8xf32> to vector<1x8x8xf32>
    %58 = vector.shape_cast %54 : vector<8x8xf32> to vector<1x8x8xf32>
    %59 = vector.shape_cast %55 : vector<8x8xf32> to vector<1x8x8xf32>
    %60 = tpu.concatenate %56, %57, %58, %59 in 0 : vector<1x8x8xf32>, vector<1x8x8xf32>, vector<1x8x8xf32>, vector<1x8x8xf32> -> vector<4x8x8xf32>
    %61 = arith.truncf %42 : vector<4x8x8xf32> to vector<4x8x8xbf16>
    %62 = arith.truncf %51 : vector<4x8x8xf32> to vector<4x8x8xbf16>
    %cst_16 = arith.constant dense<0.000000e+00> : vector<4x8x8xf32>
    %63 = tpu.matmul %61, %62, %cst_16 {dimension_numbers = #tpu.dot_dimension_numbers<[2], [2], [1], [1], [0, 0, 0, 1, 1, 1], [0], [0]>} : vector<4x8x8xbf16>, vector<4x8x8xbf16>, vector<4x8x8xf32> -> vector<4x8x8xf32>
    %cst_17 = arith.constant dense<0xFF800000> : vector<8x8xf32>
    %64 = vector.multi_reduction <maximumf>, %63, %cst_17 [0] : vector<4x8x8xf32> to vector<8x8xf32>
    %65 = vector.shape_cast %64 : vector<8x8xf32> to vector<1x8x8xf32>
    %66 = vector.broadcast %65 : vector<1x8x8xf32> to vector<4x8x8xf32>
    %67 = arith.subf %63, %66 : vector<4x8x8xf32>
    %68 = math.exp %67 : vector<4x8x8xf32>
    %cst_18 = arith.constant dense<0.000000e+00> : vector<8x8xf32>
    %69 = vector.multi_reduction <add>, %68, %cst_18 [0] : vector<4x8x8xf32> to vector<8x8xf32>
    %70 = vector.shape_cast %69 : vector<8x8xf32> to vector<1x8x8xf32>
    %71 = tpu.reciprocal %70 {approx = true} : vector<1x8x8xf32> -> vector<1x8x8xf32>
    %72 = vector.broadcast %71 : vector<1x8x8xf32> to vector<4x8x8xf32>
    %73 = arith.mulf %68, %72 : vector<4x8x8xf32>
    %74 = arith.truncf %73 : vector<4x8x8xf32> to vector<4x8x8xbf16>
    %75 = arith.truncf %60 : vector<4x8x8xf32> to vector<4x8x8xbf16>
    %cst_19 = arith.constant dense<0.000000e+00> : vector<4x8x8xf32>
    %76 = tpu.matmul %74, %75, %cst_19 {dimension_numbers = #tpu.dot_dimension_numbers<[2], [1], [1], [2], [0, 0, 0, 1, 1, 2], [0], [0]>} : vector<4x8x8xbf16>, vector<4x8x8xbf16>, vector<4x8x8xf32> -> vector<4x8x8xf32>
    %77 = arith.truncf %76 : vector<4x8x8xf32> to vector<4x8x8xbf16>
    %c0_20 = arith.constant 0 : index
    %c0_21 = arith.constant 0 : index
    %c0_22 = arith.constant 0 : index
    %c0_23 = arith.constant 0 : index
    %78 = vector.load %arg6[%c0_20, %c0_21, %c0_22, %c0_23] : memref<1x4x8x32xbf16, #tpu.memory_space<vmem>>, vector<1x4x8x32xbf16>
    %79 = vector.shape_cast %78 : vector<1x4x8x32xbf16> to vector<4x8x32xbf16>
    %cst_24 = arith.constant dense<0.000000e+00> : vector<4x8x32xf32>
    %80 = tpu.matmul %77, %79, %cst_24 {dimension_numbers = #tpu.dot_dimension_numbers<[2], [1], [1], [2], [0, 0, 0, 1, 1, 2], [0], [0]>} : vector<4x8x8xbf16>, vector<4x8x32xbf16>, vector<4x8x32xf32> -> vector<4x8x32xf32>
    %cst_25 = arith.constant dense<0.000000e+00> : vector<8x32xf32>
    %81 = vector.multi_reduction <add>, %80, %cst_25 [0] : vector<4x8x32xf32> to vector<8x32xf32>
    %82 = arith.addf %3, %81 : vector<8x32xf32>
    %c0_26 = arith.constant 0 : index
    %c0_27 = arith.constant 0 : index
    %c0_28 = arith.constant 0 : index
    %83 = vector.load %arg7[%c0_26, %c0_27, %c0_28] : memref<1x1x32xf32, #tpu.memory_space<vmem>>, vector<1x1x32xf32>
    %84 = vector.shape_cast %83 : vector<1x1x32xf32> to vector<1x32xf32>
    %85 = vector.broadcast %84 : vector<1x32xf32> to vector<8x32xf32>
    %86 = arith.addf %82, %85 : vector<8x32xf32>
    %c0_29 = arith.constant 0 : index
    %c0_30 = arith.constant 0 : index
    %c0_31 = arith.constant 0 : index
    %87 = vector.load %arg8[%c0_29, %c0_30, %c0_31] : memref<1x1x32xf32, #tpu.memory_space<vmem>>, vector<1x1x32xf32>
    %88 = vector.shape_cast %87 : vector<1x1x32xf32> to vector<1x32xf32>
    %c0_32 = arith.constant 0 : index
    %c0_33 = arith.constant 0 : index
    %c0_34 = arith.constant 0 : index
    %89 = vector.load %arg9[%c0_32, %c0_33, %c0_34] : memref<1x1x32xf32, #tpu.memory_space<vmem>>, vector<1x1x32xf32>
    %90 = vector.shape_cast %89 : vector<1x1x32xf32> to vector<1x32xf32>
    %cst_35 = arith.constant dense<0.000000e+00> : vector<8xf32>
    %91 = vector.multi_reduction <add>, %86, %cst_35 [1] : vector<8x32xf32> to vector<8xf32>
    %92 = vector.shape_cast %91 : vector<8xf32> to vector<8x1xf32>
    %cst_36 = arith.constant 3.200000e+01 : f32
    %93 = vector.broadcast %cst_36 : f32 to vector<8x1xf32>
    %94 = arith.divf %92, %93 : vector<8x1xf32>
    %95 = vector.broadcast %94 : vector<8x1xf32> to vector<8x32xf32>
    %96 = arith.subf %86, %95 : vector<8x32xf32>
    %97 = arith.mulf %96, %96 : vector<8x32xf32>
    %cst_37 = arith.constant dense<0.000000e+00> : vector<8xf32>
    %98 = vector.multi_reduction <add>, %97, %cst_37 [1] : vector<8x32xf32> to vector<8xf32>
    %99 = vector.shape_cast %98 : vector<8xf32> to vector<8x1xf32>
    %cst_38 = arith.constant 3.200000e+01 : f32
    %100 = vector.broadcast %cst_38 : f32 to vector<8x1xf32>
    %101 = arith.divf %99, %100 : vector<8x1xf32>
    %102 = vector.broadcast %94 : vector<8x1xf32> to vector<8x32xf32>
    %103 = arith.subf %86, %102 : vector<8x32xf32>
    %cst_39 = arith.constant 9.99999974E-6 : f32
    %104 = vector.broadcast %cst_39 : f32 to vector<8x1xf32>
    %105 = arith.addf %101, %104 : vector<8x1xf32>
    %106 = math.rsqrt %105 : vector<8x1xf32>
    %107 = vector.broadcast %106 : vector<8x1xf32> to vector<8x32xf32>
    %108 = arith.mulf %103, %107 : vector<8x32xf32>
    %109 = vector.broadcast %88 : vector<1x32xf32> to vector<8x32xf32>
    %110 = arith.mulf %108, %109 : vector<8x32xf32>
    %111 = vector.broadcast %90 : vector<1x32xf32> to vector<8x32xf32>
    %112 = arith.addf %110, %111 : vector<8x32xf32>
    %113 = arith.truncf %112 : vector<8x32xf32> to vector<8x32xbf16>
    %c0_40 = arith.constant 0 : index
    %c0_41 = arith.constant 0 : index
    %c0_42 = arith.constant 0 : index
    %114 = vector.load %arg10[%c0_40, %c0_41, %c0_42] : memref<1x32x64xbf16, #tpu.memory_space<vmem>>, vector<1x32x64xbf16>
    %115 = vector.shape_cast %114 : vector<1x32x64xbf16> to vector<32x64xbf16>
    %cst_43 = arith.constant dense<0.000000e+00> : vector<8x64xf32>
    %116 = tpu.matmul %113, %115, %cst_43 {dimension_numbers = #tpu.dot_dimension_numbers<[1], [0], [0], [1], [0, 0, 1, 1], [], []>} : vector<8x32xbf16>, vector<32x64xbf16>, vector<8x64xf32> -> vector<8x64xf32>
    %c0_44 = arith.constant 0 : index
    %c0_45 = arith.constant 0 : index
    %c0_46 = arith.constant 0 : index
    %117 = vector.load %arg11[%c0_44, %c0_45, %c0_46] : memref<1x1x64xf32, #tpu.memory_space<vmem>>, vector<1x1x64xf32>
    %118 = vector.shape_cast %117 : vector<1x1x64xf32> to vector<1x64xf32>
    %119 = vector.broadcast %118 : vector<1x64xf32> to vector<8x64xf32>
    %120 = arith.addf %116, %119 : vector<8x64xf32>
    %cst_47 = arith.constant 5.000000e-01 : f32
    %121 = vector.broadcast %cst_47 : f32 to vector<8x64xf32>
    %122 = arith.mulf %121, %120 : vector<8x64xf32>
    %cst_48 = arith.constant 0.707106769 : f32
    %123 = vector.broadcast %cst_48 : f32 to vector<8x64xf32>
    %124 = arith.mulf %120, %123 : vector<8x64xf32>
    %125 = math.erf %124 : vector<8x64xf32>
    %cst_49 = arith.constant 1.000000e+00 : f32
    %126 = vector.broadcast %cst_49 : f32 to vector<8x64xf32>
    %127 = arith.addf %126, %125 : vector<8x64xf32>
    %128 = arith.mulf %122, %127 : vector<8x64xf32>
    %129 = arith.truncf %128 : vector<8x64xf32> to vector<8x64xbf16>
    %c0_50 = arith.constant 0 : index
    %c0_51 = arith.constant 0 : index
    %c0_52 = arith.constant 0 : index
    %130 = vector.load %arg12[%c0_50, %c0_51, %c0_52] : memref<1x64x32xbf16, #tpu.memory_space<vmem>>, vector<1x64x32xbf16>
    %131 = vector.shape_cast %130 : vector<1x64x32xbf16> to vector<64x32xbf16>
    %cst_53 = arith.constant dense<0.000000e+00> : vector<8x32xf32>
    %132 = tpu.matmul %129, %131, %cst_53 {dimension_numbers = #tpu.dot_dimension_numbers<[1], [0], [0], [1], [0, 0, 1, 1], [], []>} : vector<8x64xbf16>, vector<64x32xbf16>, vector<8x32xf32> -> vector<8x32xf32>
    %c0_54 = arith.constant 0 : index
    %c0_55 = arith.constant 0 : index
    %c0_56 = arith.constant 0 : index
    %133 = vector.load %arg13[%c0_54, %c0_55, %c0_56] : memref<1x1x32xf32, #tpu.memory_space<vmem>>, vector<1x1x32xf32>
    %134 = vector.shape_cast %133 : vector<1x1x32xf32> to vector<1x32xf32>
    %135 = vector.broadcast %134 : vector<1x32xf32> to vector<8x32xf32>
    %136 = arith.addf %132, %135 : vector<8x32xf32>
    %137 = arith.addf %86, %136 : vector<8x32xf32>
    %c0_57 = arith.constant 0 : index
    %c0_58 = arith.constant 0 : index
    %138 = vector.load %arg15[%c0_57, %c0_58] : memref<8x32xf32, #tpu.memory_space<vmem>>, vector<8x32xf32>
    tpu.vector_store %arg15[%c0_57, %c0_58], %137 {strides = array<i32>} : memref<8x32xf32, #tpu.memory_space<vmem>>, vector<8x32xf32>,
    %c1_i32 = arith.constant 1 : i32
    %139 = arith.cmpi eq, %arg1, %c1_i32 : i32
    %140 = arith.extui %139 : i1 to i32
    %c0_i32_59 = arith.constant 0 : i32
    %141 = arith.cmpi ne, %140, %c0_i32_59 : i32
    scf.if %141 {
      %c0_60 = arith.constant 0 : index
      %c0_61 = arith.constant 0 : index
      %c0_62 = arith.constant 0 : index
      %142 = vector.load %arg14[%c0_60, %c0_61, %c0_62] : memref<1x8x32xf32, #tpu.memory_space<vmem>>, vector<1x8x32xf32>
      %143 = vector.shape_cast %142 : vector<1x8x32xf32> to vector<8x32xf32>
      %144 = vector.shape_cast %137 : vector<8x32xf32> to vector<1x8x32xf32>
      tpu.vector_store %arg14[%c0_60, %c0_61, %c0_62], %144 {strides = array<i32>} : memref<1x8x32xf32, #tpu.memory_space<vmem>>, vector<1x8x32xf32>,
    } else {
    }
    return
  }
  func.func @transform_0(%arg0: i32, %arg1: i32) -> (i32, i32, i32) {
    %c0_i32 = arith.constant 0 : i32
    %c0_i32_0 = arith.constant 0 : i32
    %c0_i32_1 = arith.constant 0 : i32
    return %arg0, %c0_i32, %c0_i32_0 : i32, i32, i32
  }
  func.func @transform_1(%arg0: i32, %arg1: i32) -> (i32, i32, i32) {
    %c0_i32 = arith.constant 0 : i32
    %c0_i32_0 = arith.constant 0 : i32
    %c0_i32_1 = arith.constant 0 : i32
    return %arg1, %c0_i32, %c0_i32_0 : i32, i32, i32
  }
  func.func @transform_2(%arg0: i32, %arg1: i32) -> (i32, i32, i32) {
    %c0_i32 = arith.constant 0 : i32
    %c0_i32_0 = arith.constant 0 : i32
    %c0_i32_1 = arith.constant 0 : i32
    return %arg1, %c0_i32, %c0_i32_0 : i32, i32, i32
  }
  func.func @transform_3(%arg0: i32, %arg1: i32) -> (i32, i32, i32) {
    %c0_i32 = arith.constant 0 : i32
    %c0_i32_0 = arith.constant 0 : i32
    %c0_i32_1 = arith.constant 0 : i32
    return %arg1, %c0_i32, %c0_i32_0 : i32, i32, i32
  }
  func.func @transform_4(%arg0: i32, %arg1: i32) -> (i32, i32, i32, i32) {
    %c0_i32 = arith.constant 0 : i32
    %c0_i32_0 = arith.constant 0 : i32
    %c0_i32_1 = arith.constant 0 : i32
    %c0_i32_2 = arith.constant 0 : i32
    return %arg1, %c0_i32, %c0_i32_0, %c0_i32_1 : i32, i32, i32, i32
  }
  func.func @transform_5(%arg0: i32, %arg1: i32) -> (i32, i32, i32) {
    %c0_i32 = arith.constant 0 : i32
    %c0_i32_0 = arith.constant 0 : i32
    %c0_i32_1 = arith.constant 0 : i32
    return %arg1, %c0_i32, %c0_i32_0 : i32, i32, i32
  }
  func.func @transform_6(%arg0: i32, %arg1: i32) -> (i32, i32, i32) {
    %c0_i32 = arith.constant 0 : i32
    %c0_i32_0 = arith.constant 0 : i32
    %c0_i32_1 = arith.constant 0 : i32
    return %arg1, %c0_i32, %c0_i32_0 : i32, i32, i32
  }
  func.func @transform_7(%arg0: i32, %arg1: i32) -> (i32, i32, i32) {
    %c0_i32 = arith.constant 0 : i32
    %c0_i32_0 = arith.constant 0 : i32
    %c0_i32_1 = arith.constant 0 : i32
    return %arg1, %c0_i32, %c0_i32_0 : i32, i32, i32
  }
  func.func @transform_8(%arg0: i32, %arg1: i32) -> (i32, i32, i32) {
    %c0_i32 = arith.constant 0 : i32
    %c0_i32_0 = arith.constant 0 : i32
    %c0_i32_1 = arith.constant 0 : i32
    return %arg1, %c0_i32, %c0_i32_0 : i32, i32, i32
  }
  func.func @transform_9(%arg0: i32, %arg1: i32) -> (i32, i32, i32) {
    %c0_i32 = arith.constant 0 : i32
    %c0_i32_0 = arith.constant 0 : i32
    %c0_i32_1 = arith.constant 0 : i32
    return %arg1, %c0_i32, %c0_i32_0 : i32, i32, i32
  }
  func.func @transform_10(%arg0: i32, %arg1: i32) -> (i32, i32, i32) {
    %c0_i32 = arith.constant 0 : i32
    %c0_i32_0 = arith.constant 0 : i32
    %c0_i32_1 = arith.constant 0 : i32
    return %arg1, %c0_i32, %c0_i32_0 : i32, i32, i32
  }
  func.func @transform_11(%arg0: i32, %arg1: i32) -> (i32, i32, i32) {
    %c0_i32 = arith.constant 0 : i32
    %c0_i32_0 = arith.constant 0 : i32
    %c0_i32_1 = arith.constant 0 : i32
    return %arg1, %c0_i32, %c0_i32_0 : i32, i32, i32
  }
  func.func @transform_12(%arg0: i32, %arg1: i32) -> (i32, i32, i32) {
    %c0_i32 = arith.constant 0 : i32
    %c0_i32_0 = arith.constant 0 : i32
    %c0_i32_1 = arith.constant 0 : i32
    return %arg0, %c0_i32, %c0_i32_0 : i32, i32, i32
  }
}

</mosaic_0001>

<bundles_post_ra>
// kernel: tpu_custom_call.1
= control target key start
LH: loop header
LB: loop body
LE: loop exit
PB: predicated region body
PF: predicated region fallthrough
CT: control target
= control target key end

     0   :  { %s3867_s0 = inlined_call_operand.hbm [shape: f32[2,8,32], index: 0, kind: input, shape index: {}]   ;;  %s3868_s1 = inlined_call_operand.hbm [shape: f32[2,1,32], index: 1, kind: input, shape index: {}]   ;;  %s3869_s2 = inlined_call_operand.hbm [shape: f32[2,1,32], index: 2, kind: input, shape index: {}]   ;;  %s3870_s3 = inlined_call_operand.hbm [shape: bf16[2,32,96], index: 3, kind: input, shape index: {}]   ;;  %s3871_s4 = inlined_call_operand.hbm [shape: bf16[2,4,8,32], index: 4, kind: input, shape index: {}]   ;;  %s3872_s5 = inlined_call_operand.hbm [shape: f32[2,1,32], index: 5, kind: input, shape index: {}]   ;;  %s3873_s6 = inlined_call_operand.hbm [shape: f32[2,1,32], index: 6, kind: input, shape index: {}]   ;;  %s3874_s7 = inlined_call_operand.hbm [shape: f32[2,1,32], index: 7, kind: input, shape index: {}]   ;;  %s3875_s8 = inlined_call_operand.hbm [shape: bf16[2,32,64], index: 8, kind: input, shape index: {}]   ;;  %s3876_s9 = inlined_call_operand.hbm [shape: f32[2,1,64], index: 9, kind: input, shape index: {}]   ;;  %s3877_s10 = inlined_call_operand.hbm [shape: bf16[2,64,32], index: 10, kind: input, shape index: {}]   ;;  %s3878_s11 = inlined_call_operand.hbm [shape: f32[2,1,32], index: 11, kind: input, shape index: {}]   ;;  %s3879_s12 = inlined_call_operand.hbm [shape: f32[2,8,32], index: 12, kind: output, shape index: {}]  }
   0x1   :  { %3917 = sst [smem:[#allocation45_spill]] %s3867_s0 }
   0x2   :  { %3918 = sst [smem:[#allocation46_spill]] %s3868_s1 }
   0x3   :  { %3919 = sst [smem:[#allocation47_spill]] %s3869_s2 }
   0x4   :  { %3920 = sst [smem:[#allocation48_spill]] %s3870_s3 }
   0x5   :  { %3921 = sst [smem:[#allocation49_spill]] %s3871_s4 }
   0x6   :  { %3922 = sst [smem:[#allocation50_spill]] %s3872_s5 }
   0x7   :  { %3923 = sst [smem:[#allocation51_spill]] %s3873_s6 }
   0x8   :  { %3924 = sst [smem:[#allocation52_spill]] %s3874_s7 }
   0x9   :  { %3925 = sst [smem:[#allocation53_spill]] %s3875_s8 }
   0xa   :  { %3926 = sst [smem:[#allocation54_spill]] %s3876_s9 }
   0xb   :  { %3927 = sst [smem:[#allocation55_spill]] %s3877_s10 }
   0xc   :  { %3928 = sst [smem:[#allocation56_spill]] %s3878_s11 }
   0xd   :  { %3929 = sst [smem:[#allocation57_spill]] %s3879_s12 }
   0xe   :  { %17 = vsyncpa [#allocation4], 0 }
   0xf   :  { %19 = vsyncpa [#allocation4 + $0x1], 0 }
  0x10   :  { %20 = vsyncpa [#allocation7], 0 }
  0x11   :  { %22 = vsyncpa [#allocation7 + $0x1], 0 }
  0x12   :  { %23 = vsyncpa [#allocation10], 0 }
  0x13   :  { %25 = vsyncpa [#allocation10 + $0x1], 0 }
  0x14   :  { %26 = vsyncpa [#allocation13], 0 }
  0x15   :  { %28 = vsyncpa [#allocation13 + $0x1], 0 }
  0x16   :  { %29 = vsyncpa [#allocation16], 0 }
  0x17   :  { %31 = vsyncpa [#allocation16 + $0x1], 0 }
  0x18   :  { %32 = vsyncpa [#allocation19], 0 }
  0x19   :  { %34 = vsyncpa [#allocation19 + $0x1], 0 }
  0x1a   :  { %35 = vsyncpa [#allocation22], 0 }
  0x1b   :  { %37 = vsyncpa [#allocation22 + $0x1], 0 }
  0x1c   :  { %38 = vsyncpa [#allocation5], 0 }
  0x1d   :  { %40 = vsyncpa [#allocation5 + $0x1], 0  ;;  %s3067_s21 = smov 0   ;;  %s3069_s22 = smov 0  }
  0x1e   :  { %s3071_s23 = smov 0   ;;  %s3073_s24 = smov 0  }
  0x1f   :  { %s3075_s25 = smov 0   ;;  %s3077_s26 = smov 0  }
  0x20   :  { %s3079_s27 = smov 0   ;;  %s3081_s28 = smov 0  }
  0x21   :  { %s3083_s29 = smov 0   ;;  %s3085_s30 = smov 0  }
  0x22   :  { %s3087_s13 = smov 0  }
  0x23 LB: > { %3930 = sst [smem:[#allocation32_spill]] %s2946_s23  ;;  %p3886_p0 = scmp.eq.s32.totalorder %s2978_s13, 0  ;;  %s2978_s13 = sphi %s3087_s13, %s46_s13   ;;  %s2974_s30 = sphi %s3085_s30, %s4003_s30   ;;  %s2970_s29 = sphi %s3083_s29, %s4009_s29   ;;  %s2966_s28 = sphi %s3081_s28, %s4001_s28   ;;  %s2962_s27 = sphi %s3079_s27, %s4008_s27   ;;  %s2958_s26 = sphi %s3077_s26, %s4000_s26   ;;  %s2954_s25 = sphi %s3075_s25, %s4007_s25   ;;  %s2950_s24 = sphi %s3073_s24, %s4006_s24   ;;  %s2946_s23 = sphi %s3071_s23, %s3998_s23   ;;  %s2942_s22 = sphi %s3069_s22, %s4005_s22   ;;  %s2938_s21 = sphi %s3067_s21, %s4004_s21  }
  0x24   : > { %3931 = sst [smem:[#allocation33_spill]] %s2958_s26  ;;  %p98_p1 = scmp.ne.s32.totalorder %s2946_s23, %s2942_s22 }
  0x25   : > { %3932 = sst [smem:[#allocation34_spill]] %s2962_s27  ;;  %p3885_p2 = scmp.lt.s32.totalorder %s2978_s13, 4 }
  0x26   : > { %3933 = sst [smem:[#allocation35_spill]] %s2966_s28  ;;  %p100_p3 = por %p98_p1, %p3886_p0 }
  0x27   : > { %3934 = sst [smem:[#allocation36_spill]] %s2974_s30  ;;  %s3129_s14 = sand.u32 1, %s2978_s13  }
  0x28   : > { %s3132_s15 = sand.u32 1, %s2946_s23   ;;  %s3135_s16 = sshll.u32 %s2970_s29, 4 }
  0x29   : > { %s3935_s1 = sld [smem:[#allocation46_spill]]  ;;  %s435_s20 = scalar_lea.vmem [#allocation6], %s3132_s15 }
  0x2a   : > { %s442_s12 = sshll.u32 %s435_s20, 4  ;;  %p3148_p4 = pnand %p3885_p2, %p100_p3  ;;  %s3144_s12 = int_to_ptr.vmem [resolvable:$true] %s442_s12 }
  0x2c   : > { %s3936_s28 = scalar_select %p3148_p4, 1, 0 }
  0x2d   : > { %p3159_p8 = pneg %p3148_p4 }
  0x2f   : > { %s3141_s19 = scalar_lea.hbm %s3935_s1, %s3135_s16  ;;  %s2477_s10 = scalar_lea.hbm %s3935_s1, 32 }
  0x30   : > { %s2472_s17 = scalar_lea.hbm %s3141_s19, 16  ;;  %p2478_p11 = scmp.lt.u32.totalorder %s3141_s19, %s3935_s1 }
  0x31   : > { %p2473_p7 = scmp.ne.s32.totalorder %s3141_s19, %s2472_s17  ;;  %p2479_p12 = scmp.lt.u32.totalorder %s2477_s10, %s2472_s17 }
  0x32   : > { %p2481_p1 = scmp.lt.u32.totalorder %s2472_s17, %s3141_s19 }
  0x33   : > { %p2475_p9 = pnand %p3159_p8, %p2473_p7  ;;  %p2480_p13 = por %p2479_p12, %p2478_p11 }
  0x35   : > { %p2476_p10 = pneg %p2475_p9  ;;  %p2482_p3 = por %p2481_p1, %p2480_p13 }
  0x37   : > { %p2483_p2 = pnand %p2482_p3, %p2476_p10 }
  0x39   : > { %2486 = shalt.err (!%p2483_p2)
}
  0x3a   : > { %s2487_s27 = scalar_lea.vmem %s3144_s12, 16  ;;  %s2980_s11 = smov [#allocation6]  }
  0x3b   : > { %p2488_p7 = scmp.ne.s32.totalorder %s3144_s12, %s2487_s27  ;;  %s2492_s20 = sshll.u32 %s2980_s11, 4  ;;  %s2493_s20 = int_to_ptr.vmem [resolvable:$false] %s2492_s20 }
  0x3c   : > { %s2494_s6 = scalar_lea.vmem %s2493_s20, 32  ;;  %p2495_p5 = scmp.lt.s32.totalorder %s3144_s12, %s2493_s20 }
  0x3d   : > { %p2490_p9 = pnand %p2488_p7, %p3159_p8  ;;  %p2496_p6 = scmp.lt.s32.totalorder %s2494_s6, %s2487_s27 }
  0x3f   : > { %p2491_p0 = pneg %p2490_p9  ;;  %p2497_p11 = por %p2496_p6, %p2495_p5 }
  0x41   : > { %p2498_p12 = pnand %p2497_p11, %p2491_p0 }
  0x43   : > { %2501 = shalt.err (!%p2498_p12)
}
  0x44   : > { %s3938_s8 = scalar_lea.sflag [#allocation7], %s3129_s14  ;;  %p3939_p2 = scmp.lt.s32.totalorder %s2978_s13, 5 }
  0x45   : > { %2314 = dma.hbm_to_vmem [thread:$0]  (!%p3148_p4), %s3141_s19, 16, %s3144_s12, %s3938_s8  }
  0x46   : > { %p3940_p10 = scmp.ge.s32.totalorder %s2978_s13, 1  ;;  %s3193_s27 = sshll.u32 %s3132_s15, 4 }
  0x47   : > { %3943 = sst [smem:[#allocation38_spill]] %s3193_s27  ;;  %s3196_s17 = sshll.u32 %s2970_s29, 8 }
  0x48   : > { %p3188_p13 = pnand %p3940_p10, %p3939_p2  ;;  %3944 = sst [smem:[#allocation39_spill]] %s3196_s17 }
  0x49   : > { %s3945_s3 = sld [smem:[#allocation48_spill]]  ;;  %s470_s12 = scalar_lea.vmem [#allocation9], %s3193_s27 }
  0x4a   : > { %s3941_s10 = scalar_select %p3188_p13, 1, 0 }
  0x4b   : > { %s477_s19 = sshll.u32 %s470_s12, 4  ;;  %s3894_s8 = scalar_lea.sflag [#allocation10], %s3129_s14  ;;  %s3205_s19 = int_to_ptr.vmem [resolvable:$true] %s477_s19 }
  0x4c   : > { %3942 = sst [smem:[#allocation37_spill]] %s3941_s10 }
  0x4f   : > { %s3202_s6 = scalar_lea.hbm %s3945_s3, %s3196_s17  ;;  %s2507_s11 = scalar_lea.hbm %s3945_s3, 512 }
  0x50   : > { %s2502_s1 = scalar_lea.hbm %s3202_s6, 256  ;;  %p2508_p1 = scmp.lt.u32.totalorder %s3202_s6, %s3945_s3 }
  0x51   : > { %p2503_p0 = scmp.ne.s32.totalorder %s3202_s6, %s2502_s1  ;;  %p2509_p3 = scmp.lt.u32.totalorder %s2507_s11, %s2502_s1 }
  0x52   : > { %p2511_p9 = scmp.lt.u32.totalorder %s2502_s1, %s3202_s6 }
  0x53   : > { %p2505_p5 = pnand %p2503_p0, %p3159_p8  ;;  %p2510_p7 = por %p2509_p3, %p2508_p1 }
  0x55   : > { %p2506_p6 = pneg %p2505_p5  ;;  %p2512_p11 = por %p2511_p9, %p2510_p7 }
  0x57   : > { %p2513_p12 = pnand %p2512_p11, %p2506_p6 }
  0x59   : > { %2516 = shalt.err (!%p2513_p12)
}
  0x5a   : > { %s2517_s12 = scalar_lea.vmem %s3205_s19, 256  ;;  %s2981_s4 = smov [#allocation9]  }
  0x5b   : > { %p2518_p2 = scmp.ne.s32.totalorder %s3205_s19, %s2517_s12  ;;  %s2522_s10 = sshll.u32 %s2981_s4, 4  ;;  %s2523_s10 = int_to_ptr.vmem [resolvable:$false] %s2522_s10 }
  0x5c   : > { %s2524_s17 = scalar_lea.vmem %s2523_s10, 512  ;;  %p2525_p5 = scmp.lt.s32.totalorder %s3205_s19, %s2523_s10 }
  0x5d   : > { %p2520_p10 = pnand %p2518_p2, %p3159_p8  ;;  %p2526_p13 = scmp.lt.s32.totalorder %s2524_s17, %s2517_s12 }
  0x5f   : > { %p2521_p0 = pneg %p2520_p10  ;;  %p2527_p1 = por %p2526_p13, %p2525_p5 }
  0x61   : > { %p2528_p3 = pnand %p2527_p1, %p2521_p0 }
  0x63   : > { %2531 = shalt.err (!%p2528_p3)
}
  0x64   : > { %s3895_s1 = smov 64   ;;  %s3902_s11 = smov 4  }
  0x65   : > { %2320 = dma.hbm_to_vmem [thread:$0]  (!%p3148_p4), %s3202_s6, 256, %s3205_s19, %s3894_s8, %s3895_s1, %s3895_s1, %s3902_s11  }
  0x66   : > { %s3946_s5 = sld [smem:[#allocation50_spill]]  ;;  %s511_s10 = scalar_lea.vmem [#allocation12], %s3132_s15 }
  0x67   : > { %s518_s17 = sshll.u32 %s511_s10, 4  ;;  %s3899_s3 = scalar_lea.sflag [#allocation13], %s3129_s14  ;;  %s519_s17 = int_to_ptr.vmem [resolvable:$true] %s518_s17 }
  0x6c   : > { %s3238_s4 = scalar_lea.hbm %s3946_s5, %s3135_s16  ;;  %s2537_s19 = scalar_lea.hbm %s3946_s5, 32 }
  0x6d   : > { %s2532_s27 = scalar_lea.hbm %s3238_s4, 16  ;;  %p2538_p9 = scmp.lt.u32.totalorder %s3238_s4, %s3946_s5 }
  0x6e   : > { %p2533_p13 = scmp.ne.s32.totalorder %s3238_s4, %s2532_s27  ;;  %p2539_p11 = scmp.lt.u32.totalorder %s2537_s19, %s2532_s27 }
  0x6f   : > { %p2541_p2 = scmp.lt.u32.totalorder %s2532_s27, %s3238_s4 }
  0x70   : > { %p2535_p6 = pnand %p2533_p13, %p3159_p8  ;;  %p2540_p12 = por %p2539_p11, %p2538_p9 }
  0x72   : > { %p2536_p7 = pneg %p2535_p6  ;;  %p2542_p10 = por %p2541_p2, %p2540_p12 }
  0x74   : > { %p2543_p0 = pnand %p2542_p10, %p2536_p7 }
  0x76   : > { %2546 = shalt.err (!%p2543_p0)
}
  0x77   : > { %s2547_s10 = scalar_lea.vmem %s519_s17, 16  ;;  %s2984_s8 = smov [#allocation12]  }
  0x78   : > { %p2548_p5 = scmp.ne.s32.totalorder %s519_s17, %s2547_s10  ;;  %s2552_s1 = sshll.u32 %s2984_s8, 4  ;;  %s2553_s1 = int_to_ptr.vmem [resolvable:$false] %s2552_s1 }
  0x79   : > { %s2554_s2 = scalar_lea.vmem %s2553_s1, 32  ;;  %p2555_p13 = scmp.lt.s32.totalorder %s519_s17, %s2553_s1 }
  0x7a   : > { %p2550_p1 = pnand %p2548_p5, %p3159_p8  ;;  %p2556_p6 = scmp.lt.s32.totalorder %s2554_s2, %s2547_s10 }
  0x7c   : > { %p2551_p3 = pneg %p2550_p1  ;;  %p2557_p4 = por %p2556_p6, %p2555_p13 }
  0x7e   : > { %p2558_p9 = pnand %p2557_p4, %p2551_p3 }
  0x80   : > { %2561 = shalt.err (!%p2558_p9)
}
  0x81   : > { %p3947_p11 = scmp.ne.s32.totalorder %s3936_s28, 0  ;;  %s3948_s7 = sld [smem:[#allocation52_spill]] }
  0x82   : > { %s545_s1 = scalar_lea.vmem [#allocation15], %s3132_s15  ;;  %s3900_s20 = scalar_lea.sflag [#allocation16], %s3129_s14 }
  0x83   : > { %2326 = dma.hbm_to_vmem [thread:$0]  (!%p3947_p11), %s3238_s4, 16, %s519_s17, %s3899_s3  }
  0x84   : > { %s552_s19 = sshll.u32 %s545_s1, 4  ;;  %s553_s19 = int_to_ptr.vmem [resolvable:$true] %s552_s19 }
  0x87   : > { %s3265_s8 = scalar_lea.hbm %s3948_s7, %s3135_s16  ;;  %s2567_s17 = scalar_lea.hbm %s3948_s7, 32 }
  0x88   : > { %s2562_s12 = scalar_lea.hbm %s3265_s8, 16  ;;  %p2568_p2 = scmp.lt.u32.totalorder %s3265_s8, %s3948_s7 }
  0x89   : > { %p2563_p4 = scmp.ne.s32.totalorder %s3265_s8, %s2562_s12  ;;  %p2569_p10 = scmp.lt.u32.totalorder %s2567_s17, %s2562_s12 }
  0x8a   : > { %p2571_p5 = scmp.lt.u32.totalorder %s2562_s12, %s3265_s8 }
  0x8b   : > { %p2565_p7 = pnand %p2563_p4, %p3159_p8  ;;  %p2570_p0 = por %p2569_p10, %p2568_p2 }
  0x8d   : > { %p2566_p12 = pneg %p2565_p7  ;;  %p2572_p1 = por %p2571_p5, %p2570_p0 }
  0x8f   : > { %p2573_p3 = pnand %p2572_p1, %p2566_p12 }
  0x91   : > { %2576 = shalt.err (!%p2573_p3)
}
  0x92   : > { %s2577_s6 = scalar_lea.vmem %s553_s19, 16  ;;  %s2985_s1 = smov [#allocation15]  }
  0x93   : > { %p2578_p13 = scmp.ne.s32.totalorder %s553_s19, %s2577_s6  ;;  %s2582_s3 = sshll.u32 %s2985_s1, 4  ;;  %s2583_s3 = int_to_ptr.vmem [resolvable:$false] %s2582_s3 }
  0x94   : > { %s2584_s10 = scalar_lea.vmem %s2583_s3, 32  ;;  %p2585_p4 = scmp.lt.s32.totalorder %s553_s19, %s2583_s3 }
  0x95   : > { %p2580_p6 = pnand %p2578_p13, %p3159_p8  ;;  %p2586_p7 = scmp.lt.s32.totalorder %s2584_s10, %s2577_s6 }
  0x97   : > { %p2581_p9 = pneg %p2580_p6  ;;  %p2587_p11 = por %p2586_p7, %p2585_p4 }
  0x99   : > { %p2588_p2 = pnand %p2587_p11, %p2581_p9 }
  0x9b   : > { %2591 = shalt.err (!%p2588_p2)
}
  0x9c   : > { %p3949_p10 = scmp.ne.s32.totalorder %s3936_s28, 0  ;;  %s3950_s9 = sld [smem:[#allocation54_spill]] }
  0x9d   : > { %s583_s3 = scalar_lea.vmem [#allocation18], %s3132_s15  ;;  %s3901_s27 = scalar_lea.sflag [#allocation19], %s3129_s14 }
  0x9e   : > { %2332 = dma.hbm_to_vmem [thread:$0]  (!%p3949_p10), %s3265_s8, 16, %s553_s19, %s3900_s20  }
  0x9f   : > { %s590_s2 = sshll.u32 %s583_s3, 4  ;;  %s591_s2 = int_to_ptr.vmem [resolvable:$true] %s590_s2 }
  0xa2   : > { %s3292_s17 = scalar_lea.hbm %s3950_s9, %s3135_s16  ;;  %s2597_s19 = scalar_lea.hbm %s3950_s9, 32 }
  0xa3   : > { %s2592_s6 = scalar_lea.hbm %s3292_s17, 16  ;;  %p2598_p5 = scmp.lt.u32.totalorder %s3292_s17, %s3950_s9 }
  0xa4   : > { %p2593_p11 = scmp.ne.s32.totalorder %s3292_s17, %s2592_s6  ;;  %p2599_p1 = scmp.lt.u32.totalorder %s2597_s19, %s2592_s6 }
  0xa5   : > { %p2601_p13 = scmp.lt.u32.totalorder %s2592_s6, %s3292_s17 }
  0xa6   : > { %p2595_p12 = pnand %p2593_p11, %p3159_p8  ;;  %p2600_p3 = por %p2599_p1, %p2598_p5 }
  0xa8   : > { %p2596_p0 = pneg %p2595_p12  ;;  %p2602_p6 = por %p2601_p13, %p2600_p3 }
  0xaa   : > { %p2603_p9 = pnand %p2602_p6, %p2596_p0 }
  0xac   : > { %2606 = shalt.err (!%p2603_p9)
}
  0xad   : > { %s2607_s4 = scalar_lea.vmem %s591_s2, 16  ;;  %s2986_s3 = smov [#allocation18]  }
  0xae   : > { %p2608_p4 = scmp.ne.s32.totalorder %s591_s2, %s2607_s4  ;;  %s2612_s20 = sshll.u32 %s2986_s3, 4  ;;  %s2613_s20 = int_to_ptr.vmem [resolvable:$false] %s2612_s20 }
  0xaf   : > { %s2614_s1 = scalar_lea.vmem %s2613_s20, 32  ;;  %p2615_p11 = scmp.lt.s32.totalorder %s591_s2, %s2613_s20 }
  0xb0   : > { %p2610_p7 = pnand %p2608_p4, %p3159_p8  ;;  %p2616_p12 = scmp.lt.s32.totalorder %s2614_s1, %s2607_s4 }
  0xb2   : > { %p2611_p2 = pneg %p2610_p7  ;;  %p2617_p10 = por %p2616_p12, %p2615_p11 }
  0xb4   : > { %p2618_p1 = pnand %p2617_p10, %p2611_p2 }
  0xb6   : > { %2621 = shalt.err (!%p2618_p1)
}
  0xb7   : > { %p3951_p5 = scmp.ne.s32.totalorder %s3936_s28, 0  ;;  %s3316_s20 = sadd.s32 4294967295, %s2978_s13  }
  0xb8   : > { %s2076_s6 = sadd.s32 4294967294, %s2978_s13   ;;  %s55_s8 = sadd.s32 1, %s2970_s29 }
  0xb9   : > { %2338 = dma.hbm_to_vmem [thread:$0]  (!%p3951_p5), %s3292_s17, 16, %s591_s2, %s3901_s27  }
  0xba   : > { %s58_s19 = sadd.s32 1, %s2974_s30  ;;  %p56_p10 = scmp.ge.s32.totalorder %s55_s8, 2 }
  0xbb   : > { %s65_s10 = sadd.s32 1, %s2958_s26  ;;  %p72_p0 = scmp.ne.s32.totalorder %s2958_s26, %s2954_s25 }
  0xbc   : > { %p78_p3 = scmp.ne.s32.totalorder %s2954_s25, %s2950_s24  ;;  %s4011_s8 = smov (%p56_p10, %s55_s8), 0 }
  0xbd   : > { %3952 = sst [smem:[#allocation40_spill]] %s4011_s8  ;;  %s4013_s19 = smov (!%p56_p10, %s58_s19), %s2974_s30 }
  0xbe   : > { %p3953_p13 = scmp.eq.s32.totalorder %s2978_s13, 0  ;;  %p79_p9 = scmp.eq.s32.totalorder %s3316_s20, 0 }
  0xbf   : > { %p60_p4 = scmp.ge.s32.totalorder %s4013_s19, 2  ;;  %s88_s2 = ssub.s32 %s2970_s29, %s4011_s8 }
  0xc0   : > { %p3334_p6 = por %p3953_p13, %p72_p0  ;;  %p3344_p7 = por %p79_p9, %p78_p3 }
  0xc1   : > { %p89_p2 = scmp.eq.s32.totalorder %s88_s2, 0  ;;  %s4015_s19 = smov (%p60_p4, %s4013_s19), 0 }
  0xc2   : > { %s3955_s12 = scalar_select %p3344_p7, 1, 0 }
  0xc3   : > { %3956 = sst [smem:[#allocation41_spill]] %s4015_s19  ;;  %s91_s4 = sadd.s32 1, %s2946_s23 }
  0xc4   : > { %p104_p11 = scmp.ne.s32.totalorder %s2942_s22, %s2938_s21  ;;  %s62_s3 = ssub.s32 %s2974_s30, %s4015_s19 }
  0xc5   : > { %p388_p12 = scmp.eq.s32.totalorder %s3316_s20, 3  ;;  %p63_p1 = scmp.eq.s32.totalorder %s62_s3, 0 }
  0xc6   : > { %p3356_p10 = por %p104_p11, %p79_p9  ;;  %p394_p4 = scmp.eq.s32.totalorder %s2076_s6, 3 }
  0xc7   : > { %s3361_s27 = scalar_select %p89_p2, %s2946_s23, %s91_s4  }
  0xc8   : > { %s3957_s1 = scalar_select %p3356_p10, 1, 0 }
  0xc9   : > { %3958 = sst [smem:[#allocation42_spill]] %s3361_s27  ;;  %p3369_p13 = por %p388_p12, %p72_p0 }
  0xca   : > { %s3364_s11 = scalar_select %p63_p1, %s2958_s26, %s65_s10  }
  0xcb   : > { %s3960_s2 = scalar_select %p3369_p13, 1, 0 }
  0xcc   : > { %3959 = sst [smem:[#allocation43_spill]] %s3364_s11  ;;  %s414_s5 = sand.u32 1, %s2958_s26  }
  0xcd   : > { %s2080_s7 = sshll.u32 %s2974_s30, 7  ;;  %p3378_p7 = por %p394_p4, %p78_p3 }
  0xce   : > { %s2079_s3 = sshll.u32 %s414_s5, 3  ;;  %s3963_s0 = sld [smem:[#allocation45_spill]] }
  0xcf   : > { %s3961_s21 = scalar_select %p3378_p7, 1, 0 }
  0xd0   : > { %p3964_p9 = scmp.lt.s32.totalorder %s2978_s13, 4  ;;  %s418_s10 = scalar_lea.vmem [#allocation3], %s2079_s3 }
  0xd1   : > { %3962 = sst [smem:[#allocation44_spill]] %s3961_s21  ;;  %s425_s8 = sshll.u32 %s418_s10, 4  ;;  %s3395_s8 = int_to_ptr.vmem [resolvable:$true] %s425_s8 }
  0xd2   : > { %p3391_p0 = pnand %p3964_p9, %p3334_p6  ;;  %s415_s30 = scalar_lea.sflag [#allocation4], %s414_s5 }
  0xd4   : > { %s3385_s4 = scalar_lea.hbm %s3963_s0, %s2080_s7  ;;  %p2624_p2 = pneg %p3391_p0 }
  0xd5   : > { %s2622_s9 = scalar_lea.hbm %s3385_s4, 128  ;;  %s2627_s17 = scalar_lea.hbm %s3963_s0, 256 }
  0xd6   : > { %p2623_p3 = scmp.ne.s32.totalorder %s3385_s4, %s2622_s9  ;;  %p2628_p6 = scmp.lt.u32.totalorder %s3385_s4, %s3963_s0 }
  0xd7   : > { %p2629_p1 = scmp.lt.u32.totalorder %s2627_s17, %s2622_s9  ;;  %p2631_p9 = scmp.lt.u32.totalorder %s2622_s9, %s3385_s4 }
  0xd8   : > { %p2625_p11 = pnand %p2624_p2, %p2623_p3 }
  0xd9   : > { %p2630_p4 = por %p2629_p1, %p2628_p6 }
  0xda   : > { %p2626_p12 = pneg %p2625_p11 }
  0xdb   : > { %p2632_p7 = por %p2631_p9, %p2630_p4 }
  0xdd   : > { %p2633_p13 = pnand %p2632_p7, %p2626_p12 }
  0xdf   : > { %2636 = shalt.err (!%p2633_p13)
}
  0xe0   : > { %s2637_s5 = scalar_lea.vmem %s3395_s8, 128  ;;  %s2987_s3 = smov [#allocation3]  }
  0xe1   : > { %p2638_p3 = scmp.ne.s32.totalorder %s3395_s8, %s2637_s5  ;;  %s2642_s10 = sshll.u32 %s2987_s3, 4  ;;  %s2643_s10 = int_to_ptr.vmem [resolvable:$false] %s2642_s10 }
  0xe2   : > { %s2644_s26 = scalar_lea.vmem %s2643_s10, 256  ;;  %p2645_p5 = scmp.lt.s32.totalorder %s3395_s8, %s2643_s10 }
  0xe3   : > { %p2640_p11 = pnand %p2638_p3, %p2624_p2  ;;  %p2646_p6 = scmp.lt.s32.totalorder %s2644_s26, %s2637_s5 }
  0xe5   : > { %p2641_p10 = pneg %p2640_p11  ;;  %p2647_p1 = por %p2646_p6, %p2645_p5 }
  0xe7   : > { %p2648_p4 = pnand %p2647_p1, %p2641_p10 }
  0xe9   : > { %2651 = shalt.err (!%p2648_p4)
}
  0xea   : > { %2311 = dma.hbm_to_vmem [thread:$0]  (!%p3391_p0), %s3385_s4, 128, %s3395_s8, %s415_s30  }
  0xeb   : > { %s3966_s7 = sld [smem:[#allocation47_spill]]  ;;  %s452_s17 = scalar_lea.vmem [#allocation8], %s3132_s15 }
  0xec   : > { %s459_s5 = sshll.u32 %s452_s17, 4  ;;  %s460_s5 = int_to_ptr.vmem [resolvable:$true] %s459_s5 }
  0xf1   : > { %s3426_s19 = scalar_lea.hbm %s3966_s7, %s3135_s16  ;;  %s2657_s30 = scalar_lea.hbm %s3966_s7, 32 }
  0xf2   : > { %s2652_s3 = scalar_lea.hbm %s3426_s19, 16  ;;  %p2658_p13 = scmp.lt.u32.totalorder %s3426_s19, %s3966_s7 }
  0xf3   : > { %p2653_p5 = scmp.ne.s32.totalorder %s3426_s19, %s2652_s3  ;;  %p2659_p0 = scmp.lt.u32.totalorder %s2657_s30, %s2652_s3 }
  0xf4   : > { %p2661_p12 = scmp.lt.u32.totalorder %s2652_s3, %s3426_s19 }
  0xf5   : > { %p2655_p7 = pnand %p2653_p5, %p3159_p8  ;;  %p2660_p2 = por %p2659_p0, %p2658_p13 }
  0xf7   : > { %p2656_p10 = pneg %p2655_p7  ;;  %p2662_p9 = por %p2661_p12, %p2660_p2 }
  0xf9   : > { %p2663_p3 = pnand %p2662_p9, %p2656_p10 }
  0xfb   : > { %2666 = shalt.err (!%p2663_p3)
}
  0xfc   : > { %s2667_s26 = scalar_lea.vmem %s460_s5, 16  ;;  %s2988_s11 = smov [#allocation8]  }
  0xfd   : > { %p2668_p11 = scmp.ne.s32.totalorder %s460_s5, %s2667_s26  ;;  %s2672_s9 = sshll.u32 %s2988_s11, 4  ;;  %s2673_s9 = int_to_ptr.vmem [resolvable:$false] %s2672_s9 }
  0xfe   : > { %s2674_s17 = scalar_lea.vmem %s2673_s9, 32  ;;  %p2675_p4 = scmp.lt.s32.totalorder %s460_s5, %s2673_s9 }
  0xff   : > { %p2670_p6 = pnand %p2668_p11, %p3159_p8  ;;  %p2676_p5 = scmp.lt.s32.totalorder %s2674_s17, %s2667_s26 }
 0x101   : > { %p2671_p1 = pneg %p2670_p6  ;;  %p2677_p7 = por %p2676_p5, %p2675_p4 }
 0x103   : > { %p2678_p0 = pnand %p2677_p7, %p2671_p1 }
 0x105   : > { %2681 = shalt.err (!%p2678_p0)
}
 0x106   : > { %p3967_p13 = scmp.ne.s32.totalorder %s3936_s28, 0  ;;  %s3968_s3 = scalar_lea.sflag [#allocation7], %s3129_s14 }
 0x107   : > { %s3969_s6 = sld [smem:[#allocation39_spill]]  ;;  %s3970_s10 = sld [smem:[#allocation38_spill]] }
 0x108   : > { %2317 = dma.hbm_to_vmem [thread:$0]  (!%p3967_p13), %s3426_s19, 16, %s460_s5, %s3968_s3  }
 0x109   : > { %s3971_s4 = sld [smem:[#allocation49_spill]] }
 0x10d   : > { %s491_s26 = scalar_lea.vmem [#allocation11], %s3970_s10 }
 0x10e   : > { %s498_s9 = sshll.u32 %s491_s26, 4  ;;  %s3455_s9 = int_to_ptr.vmem [resolvable:$true] %s498_s9 }
 0x10f   : > { %s3452_s11 = scalar_lea.hbm %s3971_s4, %s3969_s6  ;;  %s2687_s5 = scalar_lea.hbm %s3971_s4, 512 }
 0x110   : > { %s2682_s17 = scalar_lea.hbm %s3452_s11, 256  ;;  %p2688_p9 = scmp.lt.u32.totalorder %s3452_s11, %s3971_s4 }
 0x111   : > { %p2683_p10 = scmp.ne.s32.totalorder %s3452_s11, %s2682_s17  ;;  %p2689_p3 = scmp.lt.u32.totalorder %s2687_s5, %s2682_s17 }
 0x112   : > { %p2691_p6 = scmp.lt.u32.totalorder %s2682_s17, %s3452_s11 }
 0x113   : > { %p2685_p2 = pnand %p2683_p10, %p3159_p8  ;;  %p2690_p11 = por %p2689_p3, %p2688_p9 }
 0x115   : > { %p2686_p12 = pneg %p2685_p2  ;;  %p2692_p1 = por %p2691_p6, %p2690_p11 }
 0x117   : > { %p2693_p4 = pnand %p2692_p1, %p2686_p12 }
 0x119   : > { %2696 = shalt.err (!%p2693_p4)
}
 0x11a   : > { %s2697_s8 = scalar_lea.vmem %s3455_s9, 256  ;;  %s2989_s0 = smov [#allocation11]  }
 0x11b   : > { %p2698_p5 = scmp.ne.s32.totalorder %s3455_s9, %s2697_s8  ;;  %s2702_s26 = sshll.u32 %s2989_s0, 4  ;;  %s2703_s26 = int_to_ptr.vmem [resolvable:$false] %s2702_s26 }
 0x11c   : > { %s2704_s19 = scalar_lea.vmem %s2703_s26, 512  ;;  %p2705_p10 = scmp.lt.s32.totalorder %s3455_s9, %s2703_s26 }
 0x11d   : > { %p2700_p7 = pnand %p2698_p5, %p3159_p8  ;;  %p2706_p2 = scmp.lt.s32.totalorder %s2704_s19, %s2697_s8 }
 0x11f   : > { %p2701_p0 = pneg %p2700_p7  ;;  %p2707_p9 = por %p2706_p2, %p2705_p10 }
 0x121   : > { %p2708_p3 = pnand %p2707_p9, %p2701_p0 }
 0x123   : > { %2711 = shalt.err (!%p2708_p3)
}
 0x124   : > { %s3972_s17 = smov 4   ;;  %s3973_s5 = smov 64  }
 0x125   : > { %s3974_s3 = scalar_lea.sflag [#allocation10], %s3129_s14  ;;  %s3975_s26 = sld [smem:[#allocation51_spill]] }
 0x126   : > { %2323 = dma.hbm_to_vmem [thread:$0]  (!%p3967_p13), %s3452_s11, 256, %s3455_s9, %s3974_s3, %s3973_s5, %s3973_s5, %s3972_s17  }
 0x127   : > { %s528_s19 = scalar_lea.vmem [#allocation14], %s3132_s15 }
 0x128   : > { %s535_s7 = sshll.u32 %s528_s19, 4  ;;  %s536_s7 = int_to_ptr.vmem [resolvable:$true] %s535_s7 }
 0x12b   : > { %s3976_s4 = smov %s3975_s26  ;;  %s3487_s8 = scalar_lea.hbm %s3975_s26, %s3135_s16 }
 0x12c   : > { %s2712_s27 = scalar_lea.hbm %s3487_s8, 16  ;;  %s2717_s11 = scalar_lea.hbm %s3976_s4, 32 }
 0x12d   : > { %p2713_p12 = scmp.ne.s32.totalorder %s3487_s8, %s2712_s27  ;;  %p2718_p1 = scmp.lt.u32.totalorder %s3487_s8, %s3976_s4 }
 0x12e   : > { %p2719_p4 = scmp.lt.u32.totalorder %s2717_s11, %s2712_s27  ;;  %p2721_p7 = scmp.lt.u32.totalorder %s2712_s27, %s3487_s8 }
 0x12f   : > { %p2715_p11 = pnand %p2713_p12, %p3159_p8 }
 0x130   : > { %p2720_p5 = por %p2719_p4, %p2718_p1 }
 0x131   : > { %p2716_p6 = pneg %p2715_p11 }
 0x132   : > { %p2722_p0 = por %p2721_p7, %p2720_p5 }
 0x134   : > { %p2723_p10 = pnand %p2722_p0, %p2716_p6 }
 0x136   : > { %2726 = shalt.err (!%p2723_p10)
}
 0x137   : > { %s2727_s30 = scalar_lea.vmem %s536_s7, 16  ;;  %s2990_s0 = smov [#allocation14]  }
 0x138   : > { %p2728_p2 = scmp.ne.s32.totalorder %s536_s7, %s2727_s30  ;;  %s2732_s26 = sshll.u32 %s2990_s0, 4  ;;  %s2733_s26 = int_to_ptr.vmem [resolvable:$false] %s2732_s26 }
 0x139   : > { %s2734_s23 = scalar_lea.vmem %s2733_s26, 32  ;;  %p2735_p12 = scmp.lt.s32.totalorder %s536_s7, %s2733_s26 }
 0x13a   : > { %p2730_p9 = pnand %p2728_p2, %p3159_p8  ;;  %p2736_p11 = scmp.lt.s32.totalorder %s2734_s23, %s2727_s30 }
 0x13c   : > { %p2731_p3 = pneg %p2730_p9  ;;  %p2737_p13 = por %p2736_p11, %p2735_p12 }
 0x13e   : > { %p2738_p1 = pnand %p2737_p13, %p2731_p3 }
 0x140   : > { %2741 = shalt.err (!%p2738_p1)
}
 0x141   : > { %p3977_p4 = scmp.ne.s32.totalorder %s3936_s28, 0  ;;  %s3978_s27 = scalar_lea.sflag [#allocation13], %s3129_s14 }
 0x142   : > { %s3979_s11 = sld [smem:[#allocation53_spill]]  ;;  %s563_s3 = scalar_lea.vmem [#allocation17], %s3970_s10 }
 0x143   : > { %2329 = dma.hbm_to_vmem [thread:$0]  (!%p3977_p4), %s3487_s8, 16, %s536_s7, %s3978_s27  }
 0x144   : > { %s570_s30 = sshll.u32 %s563_s3, 4  ;;  %s2096_s0 = sshll.u32 %s3132_s15, 5  ;;  %s3516_s30 = int_to_ptr.vmem [resolvable:$true] %s570_s30 }
 0x148   : > { %s3513_s9 = scalar_lea.hbm %s3979_s11, %s3969_s6  ;;  %s2747_s23 = scalar_lea.hbm %s3979_s11, 512 }
 0x149   : > { %s2742_s26 = scalar_lea.hbm %s3513_s9, 256  ;;  %p2748_p7 = scmp.lt.u32.totalorder %s3513_s9, %s3979_s11 }
 0x14a   : > { %p2743_p13 = scmp.ne.s32.totalorder %s3513_s9, %s2742_s26  ;;  %p2749_p0 = scmp.lt.u32.totalorder %s2747_s23, %s2742_s26 }
 0x14b   : > { %p2751_p2 = scmp.lt.u32.totalorder %s2742_s26, %s3513_s9 }
 0x14c   : > { %p2745_p6 = pnand %p2743_p13, %p3159_p8  ;;  %p2750_p10 = por %p2749_p0, %p2748_p7 }
 0x14e   : > { %p2746_p5 = pneg %p2745_p6  ;;  %p2752_p9 = por %p2751_p2, %p2750_p10 }
 0x150   : > { %p2753_p3 = pnand %p2752_p9, %p2746_p5 }
 0x152   : > { %2756 = shalt.err (!%p2753_p3)
}
 0x153   : > { %s2757_s10 = scalar_lea.vmem %s3516_s30, 256  ;;  %s2991_s21 = smov [#allocation17]  }
 0x154   : > { %p2758_p12 = scmp.ne.s32.totalorder %s3516_s30, %s2757_s10  ;;  %s2762_s19 = sshll.u32 %s2991_s21, 4  ;;  %s2763_s19 = int_to_ptr.vmem [resolvable:$false] %s2762_s19 }
 0x155   : > { %s2764_s3 = scalar_lea.vmem %s2763_s19, 512  ;;  %p2765_p13 = scmp.lt.s32.totalorder %s3516_s30, %s2763_s19 }
 0x156   : > { %p2760_p11 = pnand %p2758_p12, %p3159_p8  ;;  %p2766_p6 = scmp.lt.s32.totalorder %s2764_s3, %s2757_s10 }
 0x158   : > { %p2761_p1 = pneg %p2760_p11  ;;  %p2767_p7 = por %p2766_p6, %p2765_p13 }
 0x15a   : > { %p2768_p0 = pnand %p2767_p7, %p2761_p1 }
 0x15c   : > { %2771 = shalt.err (!%p2768_p0)
}
 0x15d   : > { %s3980_s26 = scalar_lea.sflag [#allocation16], %s3129_s14  ;;  %s2146_s7 = sshll.u32 %s2970_s29, 9 }
 0x15e   : > { %2335 = dma.hbm_to_vmem [thread:$0]  (!%p3977_p4), %s3513_s9, 256, %s3516_s30, %s3980_s26, %s3973_s5, %s3973_s5, %s3972_s17  }
 0x15f   : > { %s3981_s6 = sld [smem:[#allocation55_spill]]  ;;  %s601_s10 = scalar_lea.vmem [#allocation20], %s2096_s0 }
 0x160   : > { %s608_s21 = sshll.u32 %s601_s10, 4  ;;  %s3553_s21 = int_to_ptr.vmem [resolvable:$true] %s608_s21 }
 0x165   : > { %s3549_s27 = scalar_lea.hbm %s3981_s6, %s2146_s7  ;;  %s2777_s3 = scalar_lea.hbm %s3981_s6, 1024 }
 0x166   : > { %s2772_s19 = scalar_lea.hbm %s3549_s27, 512  ;;  %p2778_p9 = scmp.lt.u32.totalorder %s3549_s27, %s3981_s6 }
 0x167   : > { %p2773_p5 = scmp.ne.s32.totalorder %s3549_s27, %s2772_s19  ;;  %p2779_p3 = scmp.lt.u32.totalorder %s2777_s3, %s2772_s19 }
 0x168   : > { %p2781_p11 = scmp.lt.u32.totalorder %s2772_s19, %s3549_s27 }
 0x169   : > { %p2775_p10 = pnand %p2773_p5, %p3159_p8  ;;  %p2780_p12 = por %p2779_p3, %p2778_p9 }
 0x16b   : > { %p2776_p2 = pneg %p2775_p10  ;;  %p2782_p1 = por %p2781_p11, %p2780_p12 }
 0x16d   : > { %p2783_p13 = pnand %p2782_p1, %p2776_p2 }
 0x16f   : > { %2786 = shalt.err (!%p2783_p13)
}
 0x170   : > { %s2787_s0 = scalar_lea.vmem %s3553_s21, 512  ;;  %s2992_s8 = smov [#allocation20]  }
 0x171   : > { %p2788_p6 = scmp.ne.s32.totalorder %s3553_s21, %s2787_s0  ;;  %s2792_s23 = sshll.u32 %s2992_s8, 4  ;;  %s2793_s23 = int_to_ptr.vmem [resolvable:$false] %s2792_s23 }
 0x172   : > { %s2794_s10 = scalar_lea.vmem %s2793_s23, 1024  ;;  %p2795_p5 = scmp.lt.s32.totalorder %s3553_s21, %s2793_s23 }
 0x173   : > { %p2790_p7 = pnand %p2788_p6, %p3159_p8  ;;  %p2796_p10 = scmp.lt.s32.totalorder %s2794_s10, %s2787_s0 }
 0x175   : > { %p2791_p0 = pneg %p2790_p7  ;;  %p2797_p9 = por %p2796_p10, %p2795_p5 }
 0x177   : > { %p2798_p3 = pnand %p2797_p9, %p2791_p0 }
 0x179   : > { %2801 = shalt.err (!%p2798_p3)
}
 0x17a   : > { %s3982_s19 = scalar_lea.sflag [#allocation19], %s3129_s14  ;;  %s3983_s3 = sld [smem:[#allocation56_spill]] }
 0x17b   : > { %2341 = dma.hbm_to_vmem [thread:$0]  (!%p3977_p4), %s3549_s27, 512, %s3553_s21, %s3982_s19, %s3973_s5, %s3973_s5, %s3972_s17  }
 0x17c   : > { %s621_s7 = scalar_lea.vmem [#allocation21], %s3132_s15  ;;  %s619_s14 = scalar_lea.sflag [#allocation22], %s3132_s15 }
 0x17d   : > { %s628_s0 = sshll.u32 %s621_s7, 4  ;;  %s629_s0 = int_to_ptr.vmem [resolvable:$true] %s628_s0 }
 0x180   : > { %s3585_s26 = scalar_lea.hbm %s3983_s3, %s3135_s16  ;;  %s2807_s5 = scalar_lea.hbm %s3983_s3, 32 }
 0x181   : > { %s2802_s8 = scalar_lea.hbm %s3585_s26, 16  ;;  %p2808_p1 = scmp.lt.u32.totalorder %s3585_s26, %s3983_s3 }
 0x182   : > { %p2803_p2 = scmp.ne.s32.totalorder %s3585_s26, %s2802_s8  ;;  %p2809_p13 = scmp.lt.u32.totalorder %s2807_s5, %s2802_s8 }
 0x183   : > { %p2811_p7 = scmp.lt.u32.totalorder %s2802_s8, %s3585_s26 }
 0x184   : > { %p2805_p12 = pnand %p2803_p2, %p3159_p8  ;;  %p2810_p6 = por %p2809_p13, %p2808_p1 }
 0x186   : > { %p2806_p11 = pneg %p2805_p12  ;;  %p2812_p0 = por %p2811_p7, %p2810_p6 }
 0x188   : > { %p2813_p5 = pnand %p2812_p0, %p2806_p11 }
 0x18a   : > { %2816 = shalt.err (!%p2813_p5)
}
 0x18b   : > { %s2817_s15 = scalar_lea.vmem %s629_s0, 16  ;;  %s2993_s21 = smov [#allocation21]  }
 0x18c   : > { %p2818_p10 = scmp.ne.s32.totalorder %s629_s0, %s2817_s15  ;;  %s2822_s10 = sshll.u32 %s2993_s21, 4  ;;  %s2823_s10 = int_to_ptr.vmem [resolvable:$false] %s2822_s10 }
 0x18d   : > { %s2824_s19 = scalar_lea.vmem %s2823_s10, 32  ;;  %p2825_p2 = scmp.lt.s32.totalorder %s629_s0, %s2823_s10 }
 0x18e   : > { %p2820_p9 = pnand %p2818_p10, %p3159_p8  ;;  %p2826_p12 = scmp.lt.s32.totalorder %s2824_s19, %s2817_s15 }
 0x190   : > { %p2821_p3 = pneg %p2820_p9  ;;  %p2827_p4 = por %p2826_p12, %p2825_p2 }
 0x192   : > { %p2828_p1 = pnand %p2827_p4, %p2821_p3 }
 0x194   : > { %2831 = shalt.err (!%p2828_p1)
}
 0x195   : > { %p3984_p13 = scmp.ne.s32.totalorder %s3936_s28, 0  ;;  %s3985_s9 = sld [smem:[#allocation37_spill]] }
 0x197   : > { %2344 = dma.hbm_to_vmem [thread:$0]  (!%p3984_p13), %s3585_s26, 16, %s629_s0, %s619_s14  }
 0x19b   : > { %p3986_p11 = scmp.ne.s32.totalorder %s3985_s9, 0 }
 0x19c   : > { %s3609_s18 = sand.u32 (!%p3986_p11), 1, %s2954_s25   ;;  %p3987_p8 = scmp.ne.s32.totalorder (!%p3986_p11), %s3955_s12, 0 }
 0x19d   : > { %637 = sbr.rel (%p3986_p11) target bundleno = 2721 (0xaa1), region = 68  ;;  %s2101_s30 = sshll.u32 (!%p3986_p11), %s3609_s18, 3 }
 0x19e   : > { %s640_s7 = scalar_lea.sflag (!%p3986_p11), [#allocation4], %s3609_s18  ;;  %s3615_s8 = scalar_lea.vmem (!%p3986_p11), [#allocation3], %s2101_s30 }
 0x1a4   : > { %2905 = dma.done.wait (%p3987_p8), %s640_s7, 128  }
 0x1a5   : > { %2907 = vsyncadd (%p3987_p8), %s640_s7, 4294967168  ;;  %s648_s28 = sand.u32 1, %s3316_s20   ;;  %s3623_s26 = sand.u32 1, %s2942_s22  }
 0x1a6   : > { %s649_s0 = scalar_lea.sflag [#allocation7], %s648_s28  ;;  %s651_s14 = scalar_lea.vmem [#allocation6], %s3623_s26 }
 0x1a7   : > { %p3988_p4 = scmp.ne.s32.totalorder %s3957_s1, 0 }
 0x1a9   : > { %2909 = dma.done.wait (%p3988_p4), %s649_s0, 32  }
 0x1aa   : > { %2911 = vsyncadd (%p3988_p4), %s649_s0, 4294967264  ;;  %s3631_s23 = sshll.u32 %s3623_s26, 4  ;;  %s659_s12 = scalar_lea.vmem [#allocation8], %s3623_s26 }
 0x1ab   : > { %s665_s17 = scalar_lea.sflag [#allocation10], %s648_s28  ;;  %s668_s5 = scalar_lea.vmem [#allocation9], %s3631_s23 }
 0x1ac   : > { %2913 = dma.done.wait (%p3988_p4), %s665_s17, 512  }
 0x1ad   : > { %2915 = vsyncadd (%p3988_p4), %s665_s17, 4294966784  ;;  %s3640_s20 = scalar_lea.vmem [#allocation11], %s3631_s23  ;;  %s683_s27 = scalar_lea.sflag [#allocation13], %s648_s28 }
 0x1ae   : > { %s685_s16 = scalar_lea.vmem [#allocation12], %s3623_s26 }
 0x1af   : > { %2917 = dma.done.wait (%p3988_p4), %s683_s27, 32  }
 0x1b0   : > { %2919 = vsyncadd (%p3988_p4), %s683_s27, 4294967264  ;;  %s693_s15 = scalar_lea.vmem [#allocation14], %s3623_s26  ;;  %s699_s21 = scalar_lea.sflag [#allocation16], %s648_s28 }
 0x1b1   : > { %s701_s10 = scalar_lea.vmem [#allocation15], %s3623_s26 }
 0x1b2   : > { %2921 = dma.done.wait (%p3988_p4), %s699_s21, 272  }
 0x1b3   : > { %2923 = vsyncadd (%p3988_p4), %s699_s21, 4294967024  ;;  %s710_s19 = scalar_lea.vmem [#allocation17], %s3631_s23  ;;  %s716_s9 = scalar_lea.sflag [#allocation19], %s648_s28 }
 0x1b4   : > { %2925 = dma.done.wait (%p3988_p4), %s716_s9, 528  }
 0x1b5   : > { %2927 = vsyncadd (%p3988_p4), %s716_s9, 4294966768  ;;  %s2105_s0 = sshll.u32 %s3623_s26, 5  ;;  %s733_s27 = scalar_lea.sflag [#allocation22], %s3623_s26 }
 0x1b6   : > { %s3660_s17 = scalar_lea.vmem [#allocation20], %s2105_s0  ;;  %s735_s21 = scalar_lea.vmem [#allocation21], %s3623_s26 }
 0x1b7   : > { %2929 = dma.done.wait (%p3988_p4), %s733_s27, 16  }
 0x1b8   : > { %2931 = vsyncadd (%p3988_p4), %s733_s27, 4294967280  ;;  %s3670_s28 = scalar_lea.vmem [#allocation23], %s2101_s30  ;;  %s3989_s7 = sld [smem:[#allocation34_spill]] }
 0x1be   : > { %p2107_p6 = scmp.ne.s32.totalorder %s3989_s7, 0 }
 0x1bf   : > { %v829_v0 = vld [vmem:[%s3615_s8] sm:$0xff] (!%p2107_p6)  ;;  %vm830_vm0 = vcmask (!%p2107_p6), 261120  }
 0x1c0   : > { %828 = sbr.rel (%p2107_p6) target bundleno = 455 (0x1c7), region = 120  ;;  %831 = vst.msk [vmem:[#allocation2] sm:$0xff] (!%p2107_p6), %vm830_vm0, %v829_v0 }
 0x1c7 PF: > { %v3674_v1 = vld [vmem:[#allocation2] sm:$0xff]  ;;  %vm835_vm1 = vcmask 261120   ;;  %v2994_v9 = vmov 0.0   ;;  %vm2995_vm2 = vmmov 0   ;;  %s2996_s1 = smov 104   ;;  %s2997_s30 = smov 120  }
 0x1c8   : > { %v836_v2 = vsel %vm835_vm1, %v3674_v1, 0.0  ;;  %v2448_v8 = vld [vmem:[%s668_s5] sm:$0xff]   ;;  %2182 = vmatprep.subr.bf16.mxu1 %v2994_v9  ;;  %2186 = vmatprep.mubr.msk.bf16.mxu1 %vm2995_vm2, %v2994_v9  ;;  %v2449_v10 = vld [vmem:[%s668_s5 + $0x8] sm:$0xff]   ;;  %s2998_s8 = smov 112   ;;  %vm941_vm3 = vcmask 64512   ;;  %vm1175_vm4 = vcmask 1043456  }
 0x1c9   : > { %837 = vadd.xlane.f32.xlu0 %v836_v2  ;;  %2183 = vmatpush3.bf16.msra.mxu1 %v2448_v8  ;;  %v2108_v15 = vld [vmem:[%s651_s14] ss:$0 sm:$0xff]  ;;  %s2999_s14 = smov 96   ;;  %s3990_s23 = scalar_lea.vmem [#allocation18], %s3623_s26  ;;  %vm1712_vm5 = vcmask 523264  }
 0x1ca   : > { %2196 = vmatprep.subr.bf16.mxu0 %v2994_v9  ;;  %2184 = vmatprep.subr.bf16.mxu1 %v2994_v9  ;;  %v2109_v17 = vld [vmem:[%s659_s12] ss:$0 sm:$0xff]  ;;  %s3000_s12 = smov 64   ;;  %s3991_s5 = sld [smem:[#allocation34_spill]] }
 0x1cb   : > { %2198 = vmatprep.mubr.msk.bf16.mxu0 %vm2995_vm2, %v2994_v9 }
 0x1cd   : > { %2185 = vmatpush3.bf16.msra.mxu1 %v2449_v10 }
 0x1ce   : > { %2190 = vmatprep.subr.bf16.mxu1 %v2994_v9 }
 0x1d0   : > { %p2138_p7 = scmp.ne.s32.totalorder %s3991_s5, 1 }
 0x256   : > { %v838_v3 = vpop.xlane.xlu0 %837 }
 0x257   : > { %v840_v4 = vmul.f32 0.03125, %v838_v3 }
 0x259   : > { %v841_v5 = vsub.f32 %v3674_v1, %v840_v4 }
 0x25b   : > { %v842_v6 = vmul.f32 %v841_v5, %v841_v5 }
 0x25d   : > { %v843_v7 = vsel %vm835_vm1, %v842_v6, 0.0 }
 0x25e   : > { %844 = vadd.xlane.f32.xlu0 %v843_v7 }
 0x2eb   : > { %v845_v11 = vpop.xlane.xlu0 %844 }
 0x2ec   : > { %v846_v12 = vmul.f32 0.03125, %v845_v11 }
 0x2ee   : > { %v847_v13 = vadd.f32 1e-05, %v846_v12 }
 0x2f0   : > { %2456 = vrsqrt.f32 %v847_v13 }
 0x2fa   : > { %v2457_v14 = vpop.eup %2456 }
 0x2fb   : > { %v849_v16 = vmul.f32 %v2457_v14, %v841_v5 }
 0x2fd   : > { %v856_v18 = vmul.f32 %v2108_v15, %v849_v16 }
 0x2ff   : > { %v863_v19 = vadd.f32 %v2109_v17, %v856_v18 }
 0x301   : > { %v864_v20 = vpack.c.bf16 %v863_v19, %v863_v19 }
 0x303   : > { %2187 = vmatmul.mubr.msk.bf16.vlgmr.msra.gmra.mrb[0].mxu1 %vm835_vm1, %v864_v20 }
 0x304   : > { %2192 = vmatprep.mubr.msk.bf16.mxu1 %vm2995_vm2, %v2994_v9 }
 0x3d6   : > { %v918_v21 = vpop.f32.mrb[0].mxu1 }
 0x3d7   : > { %931 = vrot.lane.b32.xlu0 %v918_v21, %s2996_s1  ;;  %925 = vrot.lane.b32.xlu1 %v918_v21, %s2997_s30  ;;  %v2188_v22 = vpop.f32.mrb[1].mxu1  ;;  %v934_v25 = vpack.c.bf16 %v918_v21, %v918_v21 }
 0x3d8   : > { %v921_v23 = vpop.f32.mrb[2].mxu1 }
 0x3d9   : > { %v2189_v24 = vpop.f32.mrb[3].mxu1 }
 0x3db   : > { %928 = vrot.lane.b32.xlu1 %v918_v21, %s2998_s8 }
 0x3df   : > { %939 = vrot.lane.b32.xlu1 %v934_v25, %s2999_s14 }
 0x449   : > { %v926_v26 = vpop.permute.xlu1 %925  ;;  %v932_v30 = vpop.permute.xlu0 %931 }
 0x44a   : > { %v935_v27 = vpack.c.bf16 %v926_v26, %v926_v26  ;;  %v937_v32 = vpack.c.bf16 %v932_v30, %v932_v30 }
 0x44c   : > { %989 = vrot.lane.b32.xlu1 %v935_v27, %s2999_s14 }
 0x44d   : > { %v929_v28 = vpop.permute.xlu1 %928 }
 0x44e   : > { %v936_v29 = vpack.c.bf16 %v929_v28, %v929_v28 }
 0x450   : > { %1267 = vrot.lane.b32.xlu0 %v936_v29, %s3000_s12  ;;  %1038 = vrot.lane.b32.xlu1 %v936_v29, %s2999_s14 }
 0x451   : > { %v940_v31 = vpop.permute.xlu1 %939 }
 0x452   : > { %v946_v33 = vsel %vm941_vm3, %v940_v31, 0 }
 0x453   : > { %2191 = vmatpush3.bf16.xpose.msra.mxu1 %v946_v33 }
 0x454   : > { %1087 = vrot.lane.b32.xlu1 %v937_v32, %s2999_s14  ;;  %2202 = vmatprep.subr.bf16.mxu1 %v2994_v9 }
 0x458   : > { %1170 = vrot.lane.b32.xlu1 %v934_v25, %s3000_s12 }
 0x45a   : > { %2193 = vmatmul.mubr.msk.bf16.vlgmr.msra.gmra.mrb[4].mxu1 %vm941_vm3, %v934_v25 }
 0x45b   : > { %2204 = vmatprep.mubr.msk.bf16.mxu1 %vm2995_vm2, %v2994_v9 }
 0x45c   : > { %1219 = vrot.lane.b32.xlu1 %v935_v27, %s3000_s12 }
 0x460   : > { %1315 = vrot.lane.b32.xlu1 %v937_v32, %s3000_s12 }
 0x4be   : > { %v990_v34 = vpop.permute.xlu1 %989 }
 0x4bf   : > { %v995_v35 = vsel %vm941_vm3, %v990_v34, 0 }
 0x4c0   : > { %2197 = vmatpush3.bf16.xpose.msra.mxu0 %v995_v35  ;;  %v1367_v35 = vld [vmem:[%s3640_s20] sm:$0xf] }
 0x4c1   : > { %2208 = vmatprep.subr.bf16.mxu0 %v2994_v9 }
 0x4c2   : > { %v1039_v36 = vpop.permute.xlu1 %1038 }
 0x4c3   : > { %v1044_v37 = vsel %vm941_vm3, %v1039_v36, 0  ;;  %v1368_v36 = vld [vmem:[%s3640_s20 + $0x4] sm:$0xf] }
 0x4c4   : > { %2203 = vmatpush3.bf16.xpose.msra.mxu1 %v1044_v37 }
 0x4c5   : > { %2214 = vmatprep.subr.bf16.mxu1 %v2994_v9 }
 0x4c6   : > { %v1088_v38 = vpop.permute.xlu1 %1087 }
 0x4c7   : > { %v1093_v39 = vsel %vm941_vm3, %v1088_v38, 0  ;;  %2199 = vmatmul.mubr.msk.bf16.vlgmr.msra.gmra.mrb[0].mxu0 %vm941_vm3, %v935_v27 }
 0x4c8   : > { %2209 = vmatpush3.bf16.xpose.msra.mxu0 %v1093_v39  ;;  %2210 = vmatprep.mubr.msk.bf16.mxu0 %vm2995_vm2, %v2994_v9  ;;  %v1375_v39 = vsel %vm1175_vm4, %v1367_v35, 0  ;;  %v2450_v35 = vld [vmem:[%s710_s19] sm:$0xff]  }
 0x4c9   : > { %2220 = vmatprep.subr.bf16.mxu0 %v2994_v9 }
 0x4ca   : > { %v1171_v40 = vpop.permute.xlu1 %1170 }
 0x4cb   : > { %v1177_v41 = vsel %vm1175_vm4, %v1171_v40, 0  ;;  %2205 = vmatmul.mubr.msk.bf16.vlgmr.msra.gmra.mrb[8].mxu1 %vm941_vm3, %v936_v29  ;;  %v1268_v29 = vpop.permute.xlu0 %1267  ;;  %v1421_v40 = vsel %vm1175_vm4, %v1368_v36, 0  ;;  %v2451_v36 = vld [vmem:[%s710_s19 + $0x8] sm:$0xff]  }
 0x4cc   : > { %2215 = vmatpush3.bf16.msra.mxu1 %v1177_v41  ;;  %2216 = vmatprep.mubr.msk.bf16.mxu1 %vm2995_vm2, %v2994_v9  ;;  %v1273_v33 = vsel %vm1175_vm4, %v1268_v29, 0  ;;  %v1369_v41 = vld [vmem:[%s3640_s20 + $0x8] sm:$0xf] }
 0x4cd   : > { %2226 = vmatprep.subr.bf16.mxu1 %v2994_v9 }
 0x4ce   : > { %v1220_v42 = vpop.permute.xlu1 %1219 }
 0x4cf   : > { %v1225_v43 = vsel %vm1175_vm4, %v1220_v42, 0  ;;  %2211 = vmatmul.mubr.msk.bf16.vlgmr.msra.gmra.mrb[4].mxu0 %vm941_vm3, %v937_v32  ;;  %v1370_v42 = vld [vmem:[%s3640_s20 + $0xc] sm:$0xf] }
 0x4d0   : > { %2221 = vmatpush3.bf16.msra.mxu0 %v1225_v43  ;;  %2222 = vmatprep.mubr.msk.bf16.mxu0 %vm2995_vm2, %v2994_v9 }
 0x4d1   : > { %2232 = vmatprep.subr.bf16.mxu0 %v2994_v9 }
 0x4d2   : > { %v1316_v30 = vpop.permute.xlu1 %1315 }
 0x4d3   : > { %v1321_v34 = vsel %vm1175_vm4, %v1316_v30, 0 }
 0x52d   : > { %v982_v44 = vpop.f32.mrb[4].mxu1 }
 0x52e   : > { %v2194_v45 = vpop.f32.mrb[5].mxu1  ;;  %v1135_v49 = vsel %vm941_vm3, %v982_v44, -inf }
 0x52f   : > { %v985_v46 = vpop.f32.mrb[6].mxu1 }
 0x530   : > { %v2195_v47 = vpop.f32.mrb[7].mxu1 }
 0x59a   : > { %v1031_v48 = vpop.f32.mrb[0].mxu0 }
 0x59b   : > { %v1136_v50 = vsel %vm941_vm3, %v1031_v48, -inf  ;;  %v2200_v51 = vpop.f32.mrb[1].mxu0 }
 0x59c   : > { %v1139_v52 = vmax.f32 %v1135_v49, %v1136_v50  ;;  %v1034_v53 = vpop.f32.mrb[2].mxu0  ;;  %v1467_v49 = vsel %vm1175_vm4, %v1369_v41, 0  ;;  %v1513_v50 = vsel %vm1175_vm4, %v1370_v42, 0  ;;  %v2127_v42 = vld [vmem:[%s701_s10] ss:$0 sm:$0xff] }
 0x59d   : > { %v2201_v54 = vpop.f32.mrb[3].mxu0 }
 0x59e   : > { %v1080_v55 = vpop.f32.mrb[8].mxu1 }
 0x59f   : > { %v2206_v56 = vpop.f32.mrb[9].mxu1  ;;  %v1137_v60 = vsel %vm941_vm3, %v1080_v55, -inf }
 0x5a0   : > { %v1083_v57 = vpop.f32.mrb[10].mxu1 }
 0x5a1   : > { %v2207_v58 = vpop.f32.mrb[11].mxu1 }
 0x5a2   : > { %v1129_v59 = vpop.f32.mrb[4].mxu0 }
 0x5a3   : > { %v1138_v61 = vsel %vm941_vm3, %v1129_v59, -inf  ;;  %v2212_v62 = vpop.f32.mrb[5].mxu0 }
 0x5a4   : > { %v1140_v63 = vmax.f32 %v1137_v60, %v1138_v61  ;;  %v1132_v0 = vpop.f32.mrb[6].mxu0 }
 0x5a5   : > { %v2213_v2 = vpop.f32.mrb[7].mxu0 }
 0x5a6   : > { %v1141_v3 = vmax.f32 %v1139_v52, %v1140_v63 }
 0x5a8   : > { %v1142_v4 = vsub.f32 %v982_v44, %v1141_v3  ;;  %v1143_v5 = vsub.f32 %v1031_v48, %v1141_v3  ;;  %v1144_v6 = vsub.f32 %v1080_v55, %v1141_v3  ;;  %v1145_v7 = vsub.f32 %v1129_v59, %v1141_v3 }
 0x5aa   : > { %v1146_v8 = vmul.f32 1.442695, %v1142_v4  ;;  %v1148_v10 = vmul.f32 1.442695, %v1143_v5  ;;  %v1150_v11 = vmul.f32 1.442695, %v1144_v6 }
 0x5ab   : > { %v1152_v12 = vmul.f32 1.442695, %v1145_v7 }
 0x5ac   : > { %2458 = vpow2.f32 %v1146_v8 }
 0x5ad   : > { %2460 = vpow2.f32 %v1148_v10 }
 0x5ae   : > { %2462 = vpow2.f32 %v1150_v11 }
 0x5af   : > { %2464 = vpow2.f32 %v1152_v12 }
 0x5b6   : > { %v2459_v13 = vpop.eup %2458 }
 0x5b7   : > { %v2461_v14 = vpop.eup %2460  ;;  %v1154_v15 = vsel %vm941_vm3, %v2459_v13, 0.0 }
 0x5b8   : > { %v2463_v16 = vpop.eup %2462  ;;  %v1155_v17 = vsel %vm941_vm3, %v2461_v14, 0.0 }
 0x5b9   : > { %v2465_v18 = vpop.eup %2464  ;;  %v1156_v19 = vadd.f32 %v1155_v17, %v1154_v15  ;;  %v1157_v20 = vsel %vm941_vm3, %v2463_v16, 0.0 }
 0x5ba   : > { %v1159_v22 = vsel %vm941_vm3, %v2465_v18, 0.0 }
 0x5bb   : > { %v1158_v21 = vadd.f32 %v1157_v20, %v1156_v19 }
 0x5bd   : > { %v1160_v23 = vadd.f32 %v1159_v22, %v1158_v21 }
 0x5bf   : > { %2466 = vrcp.f32 %v1160_v23 }
 0x5c9   : > { %v2467_v24 = vpop.eup %2466 }
 0x5ca   : > { %v1162_v25 = vmul.f32 %v2467_v24, %v2459_v13  ;;  %v1163_v26 = vmul.f32 %v2467_v24, %v2461_v14  ;;  %v1164_v27 = vmul.f32 %v2467_v24, %v2463_v16  ;;  %v1165_v28 = vmul.f32 %v2467_v24, %v2465_v18 }
 0x5cc   : > { %v1166_v31 = vpack.c.bf16 %v1162_v25, %v1162_v25  ;;  %v1167_v32 = vpack.c.bf16 %v1163_v26, %v1163_v26  ;;  %v1168_v37 = vpack.c.bf16 %v1164_v27, %v1164_v27  ;;  %v1169_v38 = vpack.c.bf16 %v1165_v28, %v1165_v28  ;;  %v2125_v26 = vld [vmem:[%s685_s16] ss:$0 sm:$0xff] }
 0x5ce   : > { %2217 = vmatmul.mubr.msk.bf16.vlgmr.msra.gmra.mrb[12].mxu1 %vm941_vm3, %v1166_v31  ;;  %2223 = vmatmul.mubr.msk.bf16.vlgmr.msra.gmra.mrb[8].mxu0 %vm941_vm3, %v1167_v32 }
 0x5cf   : > { %2227 = vmatpush3.bf16.msra.mxu1 %v1273_v33  ;;  %2233 = vmatpush3.bf16.msra.mxu0 %v1321_v34 }
 0x5d0   : > { %2228 = vmatprep.mubr.msk.bf16.mxu1 %vm2995_vm2, %v2994_v9  ;;  %2234 = vmatprep.mubr.msk.bf16.mxu0 %vm2995_vm2, %v2994_v9 }
 0x5d1   : > { %2238 = vmatprep.subr.bf16.mxu1 %v2994_v9  ;;  %2244 = vmatprep.subr.bf16.mxu0 %v2994_v9 }
 0x5d6   : > { %2229 = vmatmul.mubr.msk.bf16.vlgmr.msra.gmra.mrb[16].mxu1 %vm941_vm3, %v1168_v37  ;;  %2235 = vmatmul.mubr.msk.bf16.vlgmr.msra.gmra.mrb[12].mxu0 %vm941_vm3, %v1169_v38 }
 0x5d7   : > { %2239 = vmatpush3.bf16.msra.mxu1 %v1375_v39  ;;  %2245 = vmatpush3.bf16.msra.mxu0 %v1421_v40  ;;  %v2126_v40 = vld [vmem:[%s693_s15] ss:$0 sm:$0xff] }
 0x5d8   : > { %2240 = vmatprep.mubr.msk.bf16.mxu1 %vm2995_vm2, %v2994_v9  ;;  %2246 = vmatprep.mubr.msk.bf16.mxu0 %vm2995_vm2, %v2994_v9 }
 0x5d9   : > { %2250 = vmatprep.subr.bf16.mxu1 %v2994_v9  ;;  %2256 = vmatprep.subr.bf16.mxu0 %v2994_v9 }
 0x6a1   : > { %v1213_v43 = vpop.f32.mrb[12].mxu1  ;;  %v1261_v44 = vpop.f32.mrb[8].mxu0 }
 0x6a2   : > { %v1363_v45 = vpack.c.bf16 %v1213_v43, %v1213_v43  ;;  %v1364_v46 = vpack.c.bf16 %v1261_v44, %v1261_v44  ;;  %v2218_v47 = vpop.f32.mrb[13].mxu1  ;;  %v2224_v48 = vpop.f32.mrb[9].mxu0 }
 0x6a3   : > { %v1216_v51 = vpop.f32.mrb[14].mxu1  ;;  %v1264_v52 = vpop.f32.mrb[10].mxu0  ;;  %v2453_v47 = vld [vmem:[%s3660_s17 + $0x8] sm:$0xff]   ;;  %v2454_v48 = vld [vmem:[%s3660_s17 + $0x10] sm:$0xff]  }
 0x6a4   : > { %v2219_v53 = vpop.f32.mrb[15].mxu1  ;;  %v2225_v54 = vpop.f32.mrb[11].mxu0  ;;  %2241 = vmatmul.mubr.msk.bf16.vlgmr.msra.gmra.mrb[20].mxu1 %vm941_vm3, %v1363_v45  ;;  %2247 = vmatmul.mubr.msk.bf16.vlgmr.msra.gmra.mrb[16].mxu0 %vm941_vm3, %v1364_v46  ;;  %v2452_v46 = vld [vmem:[%s3660_s17] sm:$0xff]  }
 0x6a5   : > { %2251 = vmatpush3.bf16.msra.mxu1 %v1467_v49  ;;  %2257 = vmatpush3.bf16.msra.mxu0 %v1513_v50  ;;  %v2455_v49 = vld [vmem:[%s3660_s17 + $0x18] sm:$0xff]  }
 0x6a6   : > { %2252 = vmatprep.mubr.msk.bf16.mxu1 %vm2995_vm2, %v2994_v9  ;;  %2258 = vmatprep.mubr.msk.bf16.mxu0 %vm2995_vm2, %v2994_v9  ;;  %v2128_v50 = vld [vmem:[%s3990_s23] ss:$0 sm:$0xff] }
 0x6a7   : > { %2262 = vmatprep.subr.bf16.mxu1 %v2994_v9  ;;  %2270 = vmatprep.subr.bf16.mxu0 %v2994_v9 }
 0x6a9   : > { %v1309_v55 = vpop.f32.mrb[16].mxu1  ;;  %v1357_v56 = vpop.f32.mrb[12].mxu0 }
 0x6aa   : > { %v1365_v57 = vpack.c.bf16 %v1309_v55, %v1309_v55  ;;  %v1366_v58 = vpack.c.bf16 %v1357_v56, %v1357_v56  ;;  %v2230_v59 = vpop.f32.mrb[17].mxu1  ;;  %v2236_v60 = vpop.f32.mrb[13].mxu0 }
 0x6ab   : > { %v1312_v61 = vpop.f32.mrb[18].mxu1  ;;  %v1360_v62 = vpop.f32.mrb[14].mxu0 }
 0x6ac   : > { %v2231_v63 = vpop.f32.mrb[19].mxu1  ;;  %v2237_v0 = vpop.f32.mrb[15].mxu0  ;;  %2253 = vmatmul.mubr.msk.bf16.vlgmr.msra.gmra.mrb[24].mxu1 %vm941_vm3, %v1365_v57  ;;  %2259 = vmatmul.mubr.msk.bf16.vlgmr.msra.gmra.mrb[20].mxu0 %vm941_vm3, %v1366_v58 }
 0x6ad   : > { %2266 = vmatprep.mubr.msk.bf16.mxu1 %vm2995_vm2, %v2994_v9  ;;  %2278 = vmatprep.mubr.msk.bf16.mxu0 %vm2995_vm2, %v2994_v9 }
 0x6ae   : > { %2263 = vmatpush3.bf16.msra.mxu1 %v2450_v35  ;;  %2271 = vmatpush3.bf16.msra.mxu0 %v2452_v46 }
 0x6af   : > { %2264 = vmatprep.subr.bf16.mxu1 %v2994_v9  ;;  %2272 = vmatprep.subr.bf16.mxu0 %v2994_v9 }
 0x6b2   : > { %2265 = vmatpush3.bf16.msra.mxu1 %v2451_v36  ;;  %2273 = vmatpush3.bf16.msra.mxu0 %v2453_v47 }
 0x6b3   : > { %2274 = vmatprep.subr.bf16.mxu0 %v2994_v9 }
 0x6b6   : > { %2275 = vmatpush3.bf16.msra.mxu0 %v2454_v48 }
 0x6b7   : > { %2276 = vmatprep.subr.bf16.mxu0 %v2994_v9  ;;  %v2132_v9 = vld [vmem:[%s735_s21] ss:$0 sm:$0xff] }
 0x6ba   : > { %2277 = vmatpush3.bf16.msra.mxu0 %v2455_v49 }
 0x777   : > { %v1411_v2 = vpop.f32.mrb[20].mxu1  ;;  %v1457_v3 = vpop.f32.mrb[16].mxu0 }
 0x778   : > { %v1555_v4 = vsel %vm835_vm1, %v1411_v2, 0.0  ;;  %v1556_v5 = vsel %vm835_vm1, %v1457_v3, 0.0  ;;  %v2242_v6 = vpop.f32.mrb[21].mxu1  ;;  %v2248_v7 = vpop.f32.mrb[17].mxu0 }
 0x779   : > { %v1557_v8 = vadd.f32 %v1556_v5, %v1555_v4  ;;  %v1414_v10 = vpop.f32.mrb[22].mxu1  ;;  %v1460_v11 = vpop.f32.mrb[18].mxu0 }
 0x77a   : > { %v2243_v12 = vpop.f32.mrb[23].mxu1  ;;  %v2249_v13 = vpop.f32.mrb[19].mxu0 }
 0x77f   : > { %v1503_v14 = vpop.f32.mrb[24].mxu1  ;;  %v1549_v15 = vpop.f32.mrb[20].mxu0 }
 0x780   : > { %v1558_v16 = vsel %vm835_vm1, %v1503_v14, 0.0  ;;  %v2254_v17 = vpop.f32.mrb[25].mxu1  ;;  %v2260_v18 = vpop.f32.mrb[21].mxu0  ;;  %v1560_v22 = vsel %vm835_vm1, %v1549_v15, 0.0 }
 0x781   : > { %v1559_v19 = vadd.f32 %v1558_v16, %v1557_v8  ;;  %v1506_v20 = vpop.f32.mrb[26].mxu1  ;;  %v1552_v21 = vpop.f32.mrb[22].mxu0 }
 0x782   : > { %v2255_v23 = vpop.f32.mrb[27].mxu1  ;;  %v2261_v24 = vpop.f32.mrb[23].mxu0 }
 0x783   : > { %v1561_v25 = vadd.f32 %v1560_v22, %v1559_v19 }
 0x785   : > { %v1562_v27 = vadd.f32 %v1561_v25, %v3674_v1 }
 0x787   : > { %v1570_v28 = vadd.f32 %v2125_v26, %v1562_v27 }
 0x789   : > { %v1573_v29 = vsel %vm835_vm1, %v1570_v28, 0.0 }
 0x78a   : > { %1574 = vadd.xlane.f32.xlu0 %v1573_v29 }
 0x817   : > { %v1575_v30 = vpop.xlane.xlu0 %1574 }
 0x818   : > { %v1576_v31 = vmul.f32 0.03125, %v1575_v30 }
 0x81a   : > { %v1577_v32 = vsub.f32 %v1570_v28, %v1576_v31 }
 0x81c   : > { %v1578_v33 = vmul.f32 %v1577_v32, %v1577_v32 }
 0x81e   : > { %v1579_v34 = vsel %vm835_vm1, %v1578_v33, 0.0 }
 0x81f   : > { %1580 = vadd.xlane.f32.xlu1 %v1579_v34 }
 0x8ac   : > { %v1581_v1 = vpop.xlane.xlu1 %1580 }
 0x8ad   : > { %v1582_v37 = vmul.f32 0.03125, %v1581_v1 }
 0x8af   : > { %v1583_v38 = vadd.f32 1e-05, %v1582_v37 }
 0x8b1   : > { %2468 = vrsqrt.f32 %v1583_v38 }
 0x8bb   : > { %v2469_v39 = vpop.eup %2468 }
 0x8bc   : > { %v1585_v41 = vmul.f32 %v2469_v39, %v1577_v32 }
 0x8be   : > { %v1592_v43 = vmul.f32 %v2126_v40, %v1585_v41 }
 0x8c0   : > { %v1599_v44 = vadd.f32 %v2127_v42, %v1592_v43 }
 0x8c2   : > { %v1600_v45 = vpack.c.bf16 %v1599_v44, %v1599_v44 }
 0x8c4   : > { %2267 = vmatmul.mubr.msk.bf16.vlgmr.msra.gmra.mrb[28].mxu1 %vm835_vm1, %v1600_v45 }
 0x997   : > { %v1661_v51 = vpop.f32.mrb[28].mxu1 }
 0x998   : > { %v1662_v52 = vadd.f32 %v2128_v50, %v1661_v51  ;;  %v2268_v53 = vpop.f32.mrb[29].mxu1 }
 0x999   : > { %v1664_v54 = vpop.f32.mrb[30].mxu1 }
 0x99a   : > { %v1668_v55 = vmul.f32 0.70710677, %v1662_v52  ;;  %v2269_v56 = vpop.f32.mrb[31].mxu1  ;;  %v1667_v58 = vmul.f32 0.5, %v1662_v52 }
 0x99c   : > { %2470 = verf.f32 %v1668_v55 }
 0x9a6   : > { %v2471_v57 = vpop.eup %2470 }
 0x9a7   : > { %v1670_v59 = vadd.f32 1.0, %v2471_v57 }
 0x9a9   : > { %v1671_v60 = vmul.f32 %v1670_v59, %v1667_v58 }
 0x9ab   : > { %v1672_v61 = vpack.c.bf16 %v1671_v60, %v1671_v60 }
 0x9ad   : > { %2279 = vmatmul.mubr.msk.bf16.vlgmr.msra.gmra.mrb[24].mxu0 %vm1712_vm5, %v1672_v61 }
 0xa7f   : > { %1761 = sbr.rel (%p2138_p7) target bundleno = 2694 (0xa86), region = 124 }
 0xa80   : > { %v1750_v62 = vpop.f32.mrb[24].mxu0 }
 0xa81   : > { %v1751_v63 = vadd.f32 %v2132_v9, %v1750_v62  ;;  %v2280_v0 = vpop.f32.mrb[25].mxu0 }
 0xa82   : > { %v1753_v2 = vpop.f32.mrb[26].mxu0 }
 0xa83   : > { %v1756_v3 = vadd.f32 %v1751_v63, %v1570_v28  ;;  %v2281_v4 = vpop.f32.mrb[27].mxu0 }
 0xa85   : > { %1757 = vst.msk [vmem:[#allocation2] sm:$0xff] %vm835_vm1, %v1756_v3  ;;  %1762 = vst.msk [vmem:[%s3670_s28] sm:$0xff] (!%p2138_p7), %vm835_vm1, %v1756_v3 }
 0xa86 PF: > { %s3992_s20 = sld [smem:[#allocation35_spill]]  ;;  %s3993_s10 = sld [smem:[#allocation57_spill]] }
 0xa87   : > { %s1777_s9 = sshll.u32 %s3670_s28, 4  ;;  %s1764_s7 = scalar_lea.sflag [#allocation5], %s3609_s18  ;;  %s1778_s9 = int_to_ptr.vmem [resolvable:$true] %s1777_s9 }
 0xa88   : > { %s2832_s0 = scalar_lea.vmem %s1778_s9, 128  ;;  %p3994_p5 = scmp.ne.s32.totalorder %s3960_s2, 0 }
 0xa89   : > { %p2833_p0 = scmp.ne.s32.totalorder %s1778_s9, %s2832_s0  ;;  %s3001_s17 = smov [#allocation23]  }
 0xa8a   : > { %s2836_s27 = sshll.u32 %s3001_s17, 4  ;;  %s2837_s27 = int_to_ptr.vmem [resolvable:$false] %s2836_s27 }
 0xa8b   : > { %p2834_p10 = pnand %p2833_p0, %p3994_p5  ;;  %s2838_s21 = scalar_lea.vmem %s2837_s27, 256 }
 0xa8c   : > { %s2140_s26 = sshll.u32 %s3992_s20, 7  ;;  %p2839_p3 = scmp.lt.s32.totalorder %s1778_s9, %s2837_s27 }
 0xa8d   : > { %s3809_s19 = scalar_lea.hbm %s3993_s10, %s2140_s26  ;;  %p2835_p9 = pneg %p2834_p10 }
 0xa8e   : > { %p2840_p2 = scmp.lt.s32.totalorder %s2838_s21, %s2832_s0 }
 0xa90   : > { %p2841_p12 = por %p2840_p2, %p2839_p3 }
 0xa92   : > { %p2842_p1 = pnand %p2841_p12, %p2835_p9 }
 0xa94   : > { %2845 = shalt.err (!%p2842_p1)
}
 0xa95   : > { %s2846_s18 = scalar_lea.hbm %s3809_s19, 128  ;;  %s2850_s30 = scalar_lea.hbm %s3993_s10, 256 }
 0xa96   : > { %p2847_p13 = scmp.ne.s32.totalorder %s3809_s19, %s2846_s18  ;;  %p2851_p4 = scmp.lt.u32.totalorder %s3809_s19, %s3993_s10 }
 0xa97   : > { %p2852_p6 = scmp.lt.u32.totalorder %s2850_s30, %s2846_s18  ;;  %p2854_p0 = scmp.lt.u32.totalorder %s2846_s18, %s3809_s19 }
 0xa98   : > { %p2848_p11 = pnand %p2847_p13, %p3994_p5 }
 0xa99   : > { %p2853_p7 = por %p2852_p6, %p2851_p4 }
 0xa9a   : > { %p2849_p8 = pneg %p2848_p11 }
 0xa9b   : > { %p2855_p10 = por %p2854_p0, %p2853_p7 }
 0xa9d   : > { %p2856_p9 = pnand %p2855_p10, %p2849_p8 }
 0xa9f   : > { %2859 = shalt.err (!%p2856_p9)
}
 0xaa0   : > { %2306 = dma.vmem_to_hbm [thread:$0]  (%p3994_p5), %s1778_s9, 128, %s3809_s19, %s1764_s7  }
 0xaa1 PF: > { %s3995_s12 = sld [smem:[#allocation44_spill]]  ;;  %p2350_p3 = scmp.ge.s32.totalorder %s2978_s13, 2 }
 0xaa2   : > { %s1789_s23 = sand.u32 1, %s2950_s24  }
 0xaa3   : > { %s1790_s5 = scalar_lea.sflag [#allocation5], %s1789_s23 }
 0xaa7   : > { %p3996_p2 = scmp.ne.s32.totalorder %s3995_s12, 0 }
 0xaa9   : > { %p2346_p12 = pnand %p2350_p3, %p3996_p2 }
 0xaab   : > { %2933 = dma.done.wait (!%p2346_p12), %s1790_s5, 128  }
 0xaac   : > { %2935 = vsyncadd (!%p2346_p12), %s1790_s5, 4294967168  ;;  %s46_s13 = sadd.s32 1, %s2978_s13   ;;  %s3997_s20 = sld [smem:[#allocation32_spill]] }
 0xaad   : > { %p43_p1 = scmp.ge.s32.totalorder %s46_s13, 6   ;;  %s3998_s23 = sld [smem:[#allocation42_spill]] }
 0xaae   : > { %s3999_s2 = sld [smem:[#allocation33_spill]]  ;;  %s4000_s26 = sld [smem:[#allocation43_spill]] }
 0xaaf   : > { %s4001_s28 = sld [smem:[#allocation36_spill]]  ;;  %s4002_s16 = sld [smem:[#allocation40_spill]] }
 0xab0   : > { %s4003_s30 = sld [smem:[#allocation41_spill]]  ;;  %s4004_s21 = smov %s2942_s22 }
 0xab1   : > { %s4006_s24 = smov %s2954_s25  ;;  %s4008_s27 = smov %s2970_s29 }
 0xab2   : > { %s4005_s22 = smov %s3997_s20  ;;  %45 = sbr.rel (!%p43_p1) target bundleno = 35 (0x23), region = 254 }
 0xab4   : > { %s4007_s25 = smov %s3999_s2 }
 0xab5   : > { %s4009_s29 = smov %s4002_s16 }
 0xab9   :  { %1795 = vsyncpa [#allocation4], 1 }
 0xaba   :  { %1797 = vsyncpa [#allocation4 + $0x1], 1 }
 0xabb   :  { %1798 = vsyncpa [#allocation7], 1 }
 0xabc   :  { %1800 = vsyncpa [#allocation7 + $0x1], 1 }
 0xabd   :  { %1801 = vsyncpa [#allocation10], 1 }
 0xabe   :  { %1803 = vsyncpa [#allocation10 + $0x1], 1 }
 0xabf   :  { %1804 = vsyncpa [#allocation13], 1 }
 0xac0   :  { %1806 = vsyncpa [#allocation13 + $0x1], 1 }
 0xac1   :  { %1807 = vsyncpa [#allocation16], 1 }
 0xac2   :  { %1809 = vsyncpa [#allocation16 + $0x1], 1 }
 0xac3   :  { %1810 = vsyncpa [#allocation19], 1 }
 0xac4   :  { %1812 = vsyncpa [#allocation19 + $0x1], 1 }
 0xac5   :  { %1813 = vsyncpa [#allocation22], 1 }
 0xac6   :  { %1815 = vsyncpa [#allocation22 + $0x1], 1 }
 0xac7   :  { %1816 = vsyncpa [#allocation5], 1 }
 0xac8   :  { %1818 = vsyncpa [#allocation5 + $0x1], 1 }

</bundles_post_ra>
